<compile_context>
chip_gen: v6e
topology: v6e:2x2x1
jax: 0.10.0
libtpu: 0.0.40
codegen_flags: <defaults>
</compile_context>

<pallas_src>
import functools

import jax
import jax.numpy as jnp
from jax import lax
from jax.experimental import pallas as pl
from jax.experimental.pallas import tpu as pltpu

f32 = jnp.float32
bf16 = jnp.bfloat16


# ----------------------------- math helpers ----------------------------------

def _layernorm(x, g, b, eps=1e-6):
    # NOTE: eps=1e-6 matches the BERT-pytorch style LayerNorm used by MEANTIME;
    # torch.nn.LayerNorm default would be 1e-5 (configurable via the wrapper).
    mu = jnp.mean(x, axis=-1, keepdims=True)
    var = jnp.mean((x - mu) ** 2, axis=-1, keepdims=True)
    return (x - mu) * lax.rsqrt(var + eps) * g + b


def _gelu(x):
    # BERT-style tanh approximation of GELU
    return 0.5 * x * (1.0 + jnp.tanh(0.7978845608028654 * (x + 0.044715 * x * x * x)))


def _dot_nt(a, b):
    """(m, e) x (n, e) -> (m, n) on the MXU, bf16 operands, f32 accumulation."""
    return lax.dot_general(
        a.astype(bf16), b.astype(bf16),
        dimension_numbers=(((1,), (1,)), ((), ())),
        preferred_element_type=f32)


# --------------------------------- kernel ------------------------------------

def meantime_block_kernel(
    # inputs
    x_ref, maskq_ref, maskkv_ref,
    qa_ref, ka_ref, va_ref,
    qr_ref, kr_ref, vr_ref, relk_ref,
    wrT_ref, br_ref, rbias_ref,
    wo_ref, bo_ref, g2_ref, beta2_ref,
    w1_ref, b1_ref, w2_ref, b2_ref,
    # outputs
    out_ref,
    # scratch
    m_sc, l_sc, ctx_sc, acc_sc,
    *, La, Lr, scale, eps):

    lr = pl.program_id(2)
    kt = pl.program_id(3)
    last_kt = pl.num_programs(3) - 1

    # ---- first step for this (batch, q-tile): init accumulator, abs heads ---
    @pl.when((lr == 0) & (kt == 0))
    def _init_and_abs():
        acc_sc[...] = jnp.broadcast_to(bo_ref[...], acc_sc.shape)   # start at bo
        if La > 0:
            maskq = maskq_ref[...].astype(f32)                      # (tq, T)

            def abs_head(l, carry):
                q_l = qa_ref[l]                                     # (tq, d_k) bf16 (content + Pq)
                k_l = ka_ref[l]                                     # (T,  d_k) bf16 (content + Pk)
                v_l = va_ref[l]                                     # (T,  d_k) bf16
                s = _dot_nt(q_l, k_l) * scale + maskq               # (tq, T) f32
                m = jnp.max(s, axis=-1, keepdims=True)
                e = jnp.exp(s - m)
                p = e * pl.reciprocal(jnp.sum(e, axis=-1, keepdims=True), approx=True)
                ctx = jnp.dot(p.astype(bf16), v_l, preferred_element_type=f32)
                acc_sc[...] += jnp.dot(ctx.astype(bf16), wo_ref[l],
                                       preferred_element_type=f32)
                return carry

            lax.fori_loop(0, La, abs_head, 0)

    # ---- rel head `lr`: online (flash) softmax over kv blocks ---------------
    @pl.when(kt == 0)
    def _rel_init():
        m_sc[...] = jnp.full(m_sc.shape, -jnp.inf, m_sc.dtype)
        l_sc[...] = jnp.zeros(l_sc.shape, l_sc.dtype)
        ctx_sc[...] = jnp.zeros(ctx_sc.shape, ctx_sc.dtype)

    q = qr_ref[...]                                      # (tq, d_k) bf16
    k = kr_ref[...]                                      # (tk, d_k) bf16
    v = vr_ref[...]                                      # (tk, d_k) bf16
    relk = relk_ref[...]                                 # (tq, tk, d) bf16 (streamed slab)
    maskkv = maskkv_ref[...].astype(f32)                 # (tq, tk)

    # content score on the MXU
    s = _dot_nt(q, k)                                    # (tq, tk)

    # relative score, folded algebraically:
    #   s_rel[i, j] = sum_d relk[i, j, d] * u[i, d] + c[i]
    #   u = (q + rel_bias) @ wr^T   (wide-N MXU matmul, N = d)
    #   c = (q + rel_bias) @ br     (per-row scalar)
    qb = q.astype(f32) + rbias_ref[...]                  # (tq, d_k) f32
    u = jnp.dot(qb.astype(bf16), wrT_ref[...], preferred_element_type=f32)   # (tq, d)
    c = jnp.sum(qb * br_ref[...], axis=-1, keepdims=True)                    # (tq, 1)
    s_rel = jnp.sum(relk.astype(f32) * u[:, None, :], axis=-1)               # (tq, tk)

    s_tot = (s + s_rel + c) * scale + maskkv             # (tq, tk)

    # online softmax update
    m_prev = m_sc[...]
    m_new = jnp.maximum(m_prev, jnp.max(s_tot, axis=-1, keepdims=True))
    alpha = jnp.exp(m_prev - m_new)
    p = jnp.exp(s_tot - m_new)
    l_sc[...] = alpha * l_sc[...] + jnp.sum(p, axis=-1, keepdims=True)
    ctx_sc[...] = alpha * ctx_sc[...] + jnp.dot(p.astype(bf16), v,
                                                preferred_element_type=f32)
    m_sc[...] = m_new

    # ---- last kv block of this rel head: fold into the output accumulator ---
    @pl.when(kt == last_kt)
    def _rel_fold():
        ctx = ctx_sc[...] * pl.reciprocal(l_sc[...], approx=True)   # (tq, d_k)
        acc_sc[...] += jnp.dot(ctx.astype(bf16), wo_ref[La + lr],
                               preferred_element_type=f32)

    # ---- very last step for this (batch, q-tile): residual + LN2 + FFN ------
    @pl.when((lr == Lr - 1) & (kt == last_kt))
    def _finish():
        h1 = x_ref[...] + acc_sc[...]                    # (tq, d) f32
        hn = _layernorm(h1, g2_ref[...], beta2_ref[...], eps)
        f1 = jnp.dot(hn.astype(bf16), w1_ref[...],
                     preferred_element_type=f32) + b1_ref[...]
        f1 = _gelu(f1)
        f2 = jnp.dot(f1.astype(bf16), w2_ref[...],
                     preferred_element_type=f32) + b2_ref[...]
        out_ref[...] = h1 + f2                           # final dropout == identity


# --------------------------------- wrapper -----------------------------------

def _vmem_limit_bytes():
    """Per-generation VMEM budget (v7x-class: 64 MiB/TC -> 56 MiB; else ~100 MiB)."""
    try:
        cap = int(getattr(pltpu.get_tpu_info(), "vmem_capacity_bytes",
                          128 * 1024 * 1024))
    except Exception:
        cap = 128 * 1024 * 1024
    if cap <= 64 * 1024 * 1024:
        return 56 * 1024 * 1024
    return 100 * 1024 * 1024


def _pick_tk(T, tq, d, budget_bytes):
    """Largest kv tile whose rel-slab cost (2 bf16 buffers + f32 promote ~ 8B/elem)
    fits the budget.  tk must divide T; prefer lane-dense multiples of 128."""
    step = 128 if (T >= 128 and T % 128 == 0) else 8
    cands = sorted({c for c in range(step, T + 1, step) if T % c == 0} | {T})
    best = cands[0]
    for c in cands:
        if 8 * tq * c * d <= budget_bytes:
            best = c
    return best


def meantime_block_forward(x, mask, abs_kernel, rel_kernel, params, La, Lr,
                           *, tq=None, tk=None, eps=1e-6):
    """x: (B,T,d); mask: (B,1,T,T); abs_kernel: (B,La,T,d); rel_kernel: (B,Lr,T,T,d)."""
    B, T, d = x.shape
    H = La + Lr
    assert d % H == 0
    d_k = d // H
    scale = 1.0 / (d_k ** 0.5)
    assert Lr >= 1, "this wrapper requires at least one relative head"
    La_ = max(La, 1)

    vmem_limit = _vmem_limit_bytes()
    if tq is None:
        tq = min(T, 128)
    assert T % tq == 0
    if tk is None:
        tk = _pick_tk(T, tq, d, budget_bytes=vmem_limit // 2)
    assert T % tk == 0 and (tk == T or tk % 8 == 0)
    n_qt, n_kt = T // tq, T // tk

    x = x.astype(f32)

    # ---- hoisted prologue (plain XLA): LN1, content Q/K/V, abs projections --
    xn = _layernorm(x, params["g1"], params["beta1"], eps)

    def heads(y):                                    # (B, T, d) -> (B, H, T, d_k)
        return y.reshape(B, T, H, d_k).transpose(0, 2, 1, 3)

    q_all = heads(xn @ params["wq"] + params["bq"])
    k_all = heads(xn @ params["wk"] + params["bk"])
    v_all = heads(xn @ params["wv"] + params["bv"])

    if La > 0:
        pq = jnp.einsum("bltd,lde->blte", abs_kernel, params["wpq"]) + params["bpq"][None]
        pk = jnp.einsum("bltd,lde->blte", abs_kernel, params["wpk"]) + params["bpk"][None]
        qa = (q_all[:, :La] + pq).astype(bf16)       # (B, La, T, d_k)
        ka = (k_all[:, :La] + pk).astype(bf16)
        va = v_all[:, :La].astype(bf16)
    else:                                            # dummies, never read in-kernel
        qa = jnp.zeros((B, 1, T, d_k), bf16)
        ka = jnp.zeros((B, 1, T, d_k), bf16)
        va = jnp.zeros((B, 1, T, d_k), bf16)

    qr = q_all[:, La:].reshape(B * Lr, T, d_k).astype(bf16)
    kr = k_all[:, La:].reshape(B * Lr, T, d_k).astype(bf16)
    vr = v_all[:, La:].reshape(B * Lr, T, d_k).astype(bf16)

    # TODO(synk): produce rel_kernel in bf16 upstream; this cast is an extra
    # full HBM read+write of the big rel tensor.
    relk = rel_kernel.reshape(B * Lr, T, T, d).astype(bf16)

    # additive mask bias (bf16 halves the per-step mask DMA)
    maskb = jnp.where(mask[:, 0] == 0.0, -1e9, 0.0).astype(bf16)          # (B, T, T)
    # kv-blocked view with tk on the minor axis of the *array*, so the streamed
    # (tq, tk) block satisfies lane tiling for any tk (no in-kernel lane slice).
    mask_kv = maskb.reshape(B, T, n_kt, tk).transpose(0, 2, 1, 3)         # (B, n_kt, T, tk)

    wrT = jnp.swapaxes(params["wr"], 1, 2).astype(bf16)                   # (Lr, d_k, d)
    rel_params = [wrT,
                  params["br"].astype(f32),                               # (Lr, 1, d_k)
                  params["relbias"].astype(f32)]                          # (Lr, 1, d_k)
    const_params = [
        params["wo"].reshape(H, d_k, d).astype(bf16), params["bo"].astype(f32),
        params["g2"].astype(f32), params["beta2"].astype(f32),
        params["w1"].astype(bf16), params["b1"].astype(f32),
        params["w2"].astype(bf16), params["b2"].astype(f32),
    ]

    def _const(arr):
        nd = arr.ndim
        return pl.BlockSpec(arr.shape, lambda b, q, l, k, _nd=nd: (0,) * _nd)

    in_specs = [
        pl.BlockSpec((None, tq, d),         lambda b, q, l, k: (b, q, 0)),          # x (residual)
        pl.BlockSpec((None, tq, T),         lambda b, q, l, k: (b, q, 0)),          # mask rows (abs heads)
        pl.BlockSpec((None, None, tq, tk),  lambda b, q, l, k: (b, k, q, 0)),       # mask kv block (rel head)
        pl.BlockSpec((None, La_, tq, d_k),  lambda b, q, l, k: (b, 0, q, 0)),       # abs Q (+Pq)
        pl.BlockSpec((None, La_, T, d_k),   lambda b, q, l, k: (b, 0, 0, 0)),       # abs K (+Pk)
        pl.BlockSpec((None, La_, T, d_k),   lambda b, q, l, k: (b, 0, 0, 0)),       # abs V
        pl.BlockSpec((None, tq, d_k),       lambda b, q, l, k: (b * Lr + l, q, 0)), # rel Q
        pl.BlockSpec((None, tk, d_k),       lambda b, q, l, k: (b * Lr + l, k, 0)), # rel K block
        pl.BlockSpec((None, tk, d_k),       lambda b, q, l, k: (b * Lr + l, k, 0)), # rel V block
        pl.BlockSpec((None, tq, tk, d),     lambda b, q, l, k: (b * Lr + l, q, k, 0)),  # rel slab (streamed)
        pl.BlockSpec((None, d_k, d),        lambda b, q, l, k: (l, 0, 0)),          # wr^T (this rel head)
        pl.BlockSpec((None, 1, d_k),        lambda b, q, l, k: (l, 0, 0)),          # br
        pl.BlockSpec((None, 1, d_k),        lambda b, q, l, k: (l, 0, 0)),          # rel_bias
    ] + [_const(p) for p in const_params]

    kernel = functools.partial(meantime_block_kernel,
                               La=La, Lr=Lr, scale=scale, eps=eps)

    return pl.pallas_call(
        kernel,
        out_shape=jax.ShapeDtypeStruct((B, T, d), f32),
        grid=(B, n_qt, Lr, n_kt),
        in_specs=in_specs,
        out_specs=pl.BlockSpec((None, tq, d), lambda b, q, l, k: (b, q, 0)),
        scratch_shapes=[
            pltpu.VMEM((tq, 1), f32),      # rel head: running max
            pltpu.VMEM((tq, 1), f32),      # rel head: running denom
            pltpu.VMEM((tq, d_k), f32),    # rel head: running context
            pltpu.VMEM((tq, d), f32),      # attention-output accumulator (all heads)
        ],
        compiler_params=pltpu.CompilerParams(
            dimension_semantics=("parallel", "parallel", "arbitrary", "arbitrary"),
            vmem_limit_bytes=vmem_limit),
    )(x, maskb, mask_kv, qa, ka, va, qr, kr, vr, relk, *rel_params, *const_params)


# --------------------------- pure-JAX reference -------------------------------

def reference_forward(x, mask, absk, relk, p, La, Lr, eps=1e-6):
    B, T, d = x.shape
    h = La + Lr
    d_k = d // h
    scale = 1.0 / (d_k ** 0.5)

    xn = _layernorm(x, p["g1"], p["beta1"], eps)
    q = xn @ p["wq"] + p["bq"]
    k = xn @ p["wk"] + p["bk"]
    v = xn @ p["wv"] + p["bv"]
    qh = q.reshape(B, T, h, d_k).transpose(0, 2, 1, 3)
    kh = k.reshape(B, T, h, d_k).transpose(0, 2, 1, 3)
    vh = v.reshape(B, T, h, d_k).transpose(0, 2, 1, 3)

    score_parts = []
    if La > 0:
        Xq, Xk = qh[:, :La], kh[:, :La]
        Pq = jnp.einsum("bltd,lde->blte", absk, p["wpq"]) + p["bpq"][None]
        Pk = jnp.einsum("bltd,lde->blte", absk, p["wpk"]) + p["bpk"][None]
        score_parts.append(jnp.einsum("blid,bljd->blij", Xq + Pq, Xk + Pk))
    if Lr > 0:
        Xq, Xk = qh[:, La:], kh[:, La:]
        R = jnp.einsum("blijd,lde->blije", relk, p["wr"]) + p["br"][None, :, None]
        rel = jnp.einsum("blid,bljd->blij", Xq, Xk)
        rel = rel + jnp.einsum("blid,blijd->blij", Xq + p["relbias"][None], R)
        score_parts.append(rel)
    scores = jnp.concatenate(score_parts, axis=1) * scale
    scores = jnp.where(mask == 0.0, -1e9, scores)
    attn = jax.nn.softmax(scores, axis=-1)
    ctx = jnp.einsum("bhij,bhjd->bhid", attn, vh)
    ctx = ctx.transpose(0, 2, 1, 3).reshape(B, T, d)
    h1 = x + (ctx @ p["wo"] + p["bo"])

    hn = _layernorm(h1, p["g2"], p["beta2"], eps)
    ff = _gelu(hn @ p["w1"] + p["b1"]) @ p["w2"] + p["b2"]
    return h1 + ff


# ----------------------------------- main ------------------------------------

if __name__ == "__main__":
    B, T, d = 2, 16, 32
    La, Lr = 1, 1
    H = La + Lr
    d_k = d // H
    d_ff = 4 * d
    tq, tk = 8, 8     # 2 query tiles x 2 kv tiles -> exercises the full 4-D grid

    keys = jax.random.split(jax.random.PRNGKey(0), 27)
    ki = iter(keys)
    s = 0.05

    def rnd(shape):
        return jax.random.normal(next(ki), shape, dtype=jnp.float32) * s

    params = {
        "wq": rnd((d, d)), "bq": rnd((1, d)),
        "wk": rnd((d, d)), "bk": rnd((1, d)),
        "wv": rnd((d, d)), "bv": rnd((1, d)),
        "wpq": rnd((La, d, d_k)), "bpq": rnd((La, 1, d_k)),
        "wpk": rnd((La, d, d_k)), "bpk": rnd((La, 1, d_k)),
        "wr": rnd((Lr, d, d_k)), "br": rnd((Lr, 1, d_k)),
        "relbias": rnd((Lr, 1, d_k)),
        "wo": rnd((d, d)), "bo": rnd((1, d)),
        "g1": jnp.ones((1, d), jnp.float32), "beta1": jnp.zeros((1, d), jnp.float32),
        "g2": jnp.ones((1, d), jnp.float32), "beta2": jnp.zeros((1, d), jnp.float32),
        "w1": rnd((d, d_ff)), "b1": rnd((1, d_ff)),
        "w2": rnd((d_ff, d)), "b2": rnd((1, d)),
    }

    x = jax.random.normal(next(ki), (B, T, d), dtype=jnp.float32)
    abs_kernel = jax.random.normal(next(ki), (B, La, T, d), dtype=jnp.float32)
    rel_kernel = jax.random.normal(next(ki), (B, Lr, T, T, d), dtype=jnp.float32)
    # causal mask, broadcast over heads (B, 1, T, T)
    mask = jnp.broadcast_to(jnp.tril(jnp.ones((T, T), jnp.float32)), (B, 1, T, T))

    out = meantime_block_forward(x, mask, abs_kernel, rel_kernel, params, La, Lr,
                                 tq=tq, tk=tk)
    out = jax.block_until_ready(out)

    ref = reference_forward(x, mask, abs_kernel, rel_kernel, params, La, Lr)
    assert out.shape == (B, T, d)
    max_err = float(jnp.max(jnp.abs(out - ref)))
    # bf16 MXU operands -> tolerance looser than a pure-f32 comparison
    assert jnp.allclose(out, ref, rtol=2e-2, atol=2e-2), \
        f"mismatch vs JAX reference (max abs err {max_err})"

    # TODO(synk): dropout layers are identity here (p=0 / eval mode).
    print("KERNEL_OK")
</pallas_src>

<mosaic_0001>
module attributes {stable_mosaic.version = 11 : i64} {
  func.func @meantime_block_kernel(%arg0: i32, %arg1: i32, %arg2: i32, %arg3: i32, %arg4: memref<1x8x32xf32, #tpu.memory_space<vmem>>, %arg5: memref<1x8x16xbf16, #tpu.memory_space<vmem>>, %arg6: memref<1x1x8x8xbf16, #tpu.memory_space<vmem>>, %arg7: memref<1x1x8x16xbf16, #tpu.memory_space<vmem>>, %arg8: memref<1x1x16x16xbf16, #tpu.memory_space<vmem>>, %arg9: memref<1x1x16x16xbf16, #tpu.memory_space<vmem>>, %arg10: memref<1x8x16xbf16, #tpu.memory_space<vmem>>, %arg11: memref<1x8x16xbf16, #tpu.memory_space<vmem>>, %arg12: memref<1x8x16xbf16, #tpu.memory_space<vmem>>, %arg13: memref<1x8x8x32xbf16, #tpu.memory_space<vmem>>, %arg14: memref<1x16x32xbf16, #tpu.memory_space<vmem>>, %arg15: memref<1x1x16xf32, #tpu.memory_space<vmem>>, %arg16: memref<1x1x16xf32, #tpu.memory_space<vmem>>, %arg17: memref<2x16x32xbf16, #tpu.memory_space<vmem>>, %arg18: memref<1x32xf32, #tpu.memory_space<vmem>>, %arg19: memref<1x32xf32, #tpu.memory_space<vmem>>, %arg20: memref<1x32xf32, #tpu.memory_space<vmem>>, %arg21: memref<32x128xbf16, #tpu.memory_space<vmem>>, %arg22: memref<1x128xf32, #tpu.memory_space<vmem>>, %arg23: memref<128x32xbf16, #tpu.memory_space<vmem>>, %arg24: memref<1x32xf32, #tpu.memory_space<vmem>>, %arg25: memref<1x8x32xf32, #tpu.memory_space<vmem>>, %arg26: memref<8x1xf32, #tpu.memory_space<vmem>>, %arg27: memref<8x1xf32, #tpu.memory_space<vmem>>, %arg28: memref<8x16xf32, #tpu.memory_space<vmem>>, %arg29: memref<8x32xf32, #tpu.memory_space<vmem>>) attributes {dimension_semantics = [#tpu.dimension_semantics<parallel>, #tpu.dimension_semantics<parallel>, #tpu.dimension_semantics<arbitrary>, #tpu.dimension_semantics<arbitrary>], iteration_bounds = array<i64: 2, 2, 1, 2>, scalar_prefetch = 0 : i64, scratch_operands = 4 : i64, tpu.core_type = #tpu.core_type<tc>, window_params = [{transform_indices = @transform_0, window_bounds = array<i64: 1, 8, 32>}, {transform_indices = @transform_1, window_bounds = array<i64: 1, 8, 16>}, {transform_indices = @transform_2, window_bounds = array<i64: 1, 1, 8, 8>}, {transform_indices = @transform_3, window_bounds = array<i64: 1, 1, 8, 16>}, {transform_indices = @transform_4, window_bounds = array<i64: 1, 1, 16, 16>}, {transform_indices = @transform_5, window_bounds = array<i64: 1, 1, 16, 16>}, {transform_indices = @transform_6, window_bounds = array<i64: 1, 8, 16>}, {transform_indices = @transform_7, window_bounds = array<i64: 1, 8, 16>}, {transform_indices = @transform_8, window_bounds = array<i64: 1, 8, 16>}, {transform_indices = @transform_9, window_bounds = array<i64: 1, 8, 8, 32>}, {transform_indices = @transform_10, window_bounds = array<i64: 1, 16, 32>}, {transform_indices = @transform_11, window_bounds = array<i64: 1, 1, 16>}, {transform_indices = @transform_12, window_bounds = array<i64: 1, 1, 16>}, {pipeline_mode = #tpu.pipeline_mode<synchronous>, transform_indices = @transform_13, window_bounds = array<i64: 2, 16, 32>}, {pipeline_mode = #tpu.pipeline_mode<synchronous>, transform_indices = @transform_14, window_bounds = array<i64: 1, 32>}, {pipeline_mode = #tpu.pipeline_mode<synchronous>, transform_indices = @transform_15, window_bounds = array<i64: 1, 32>}, {pipeline_mode = #tpu.pipeline_mode<synchronous>, transform_indices = @transform_16, window_bounds = array<i64: 1, 32>}, {pipeline_mode = #tpu.pipeline_mode<synchronous>, transform_indices = @transform_17, window_bounds = array<i64: 32, 128>}, {pipeline_mode = #tpu.pipeline_mode<synchronous>, transform_indices = @transform_18, window_bounds = array<i64: 1, 128>}, {pipeline_mode = #tpu.pipeline_mode<synchronous>, transform_indices = @transform_19, window_bounds = array<i64: 128, 32>}, {pipeline_mode = #tpu.pipeline_mode<synchronous>, transform_indices = @transform_20, window_bounds = array<i64: 1, 32>}, {transform_indices = @transform_21, window_bounds = array<i64: 1, 8, 32>}]} {
    %c0_i32 = arith.constant 0 : i32
    %0 = arith.cmpi eq, %arg2, %c0_i32 : i32
    %c0_i32_0 = arith.constant 0 : i32
    %1 = arith.cmpi eq, %arg3, %c0_i32_0 : i32
    %2 = arith.andi %0, %1 : i1
    %3 = arith.extui %2 : i1 to i32
    %c0_i32_1 = arith.constant 0 : i32
    %4 = arith.cmpi ne, %3, %c0_i32_1 : i32
    scf.if %4 {
      %c0_52 = arith.constant 0 : index
      %c0_53 = arith.constant 0 : index
      %77 = vector.load %arg18[%c0_52, %c0_53] : memref<1x32xf32, #tpu.memory_space<vmem>>, vector<1x32xf32>
      %78 = vector.shape_cast %77 : vector<1x32xf32> to vector<1x32xf32>
      %79 = vector.broadcast %78 : vector<1x32xf32> to vector<8x32xf32>
      %c0_54 = arith.constant 0 : index
      %c0_55 = arith.constant 0 : index
      %80 = vector.load %arg29[%c0_54, %c0_55] : memref<8x32xf32, #tpu.memory_space<vmem>>, vector<8x32xf32>
      tpu.vector_store %arg29[%c0_54, %c0_55], %79 {strides = array<i32>} : memref<8x32xf32, #tpu.memory_space<vmem>>, vector<8x32xf32>,
      %c0_56 = arith.constant 0 : index
      %c0_57 = arith.constant 0 : index
      %c0_58 = arith.constant 0 : index
      %81 = vector.load %arg5[%c0_56, %c0_57, %c0_58] : memref<1x8x16xbf16, #tpu.memory_space<vmem>>, vector<1x8x16xbf16>
      %82 = vector.shape_cast %81 : vector<1x8x16xbf16> to vector<8x16xbf16>
      %83 = arith.extf %82 : vector<8x16xbf16> to vector<8x16xf32>
      %c0_i32_59 = arith.constant 0 : i32
      %c0_60 = arith.constant 0 : index
      %84 = arith.index_cast %c0_i32_59 : i32 to index
      %c0_61 = arith.constant 0 : index
      %c0_62 = arith.constant 0 : index
      %85 = vector.load %arg7[%c0_60, %84, %c0_61, %c0_62] : memref<1x1x8x16xbf16, #tpu.memory_space<vmem>>, vector<1x1x8x16xbf16>
      %86 = vector.shape_cast %85 : vector<1x1x8x16xbf16> to vector<8x16xbf16>
      %c0_63 = arith.constant 0 : index
      %87 = arith.index_cast %c0_i32_59 : i32 to index
      %c0_64 = arith.constant 0 : index
      %c0_65 = arith.constant 0 : index
      %88 = vector.load %arg8[%c0_63, %87, %c0_64, %c0_65] : memref<1x1x16x16xbf16, #tpu.memory_space<vmem>>, vector<1x1x16x16xbf16>
      %89 = vector.shape_cast %88 : vector<1x1x16x16xbf16> to vector<16x16xbf16>
      %c0_66 = arith.constant 0 : index
      %90 = arith.index_cast %c0_i32_59 : i32 to index
      %c0_67 = arith.constant 0 : index
      %c0_68 = arith.constant 0 : index
      %91 = vector.load %arg9[%c0_66, %90, %c0_67, %c0_68] : memref<1x1x16x16xbf16, #tpu.memory_space<vmem>>, vector<1x1x16x16xbf16>
      %92 = vector.shape_cast %91 : vector<1x1x16x16xbf16> to vector<16x16xbf16>
      %cst_69 = arith.constant dense<0.000000e+00> : vector<8x16xf32>
      %93 = tpu.matmul %86, %89, %cst_69 {dimension_numbers = #tpu.dot_dimension_numbers<[1], [1], [0], [0], [0, 0, 1, 0], [], []>} : vector<8x16xbf16>, vector<16x16xbf16>, vector<8x16xf32> -> vector<8x16xf32>
      %cst_70 = arith.constant 2.500000e-01 : f32
      %94 = vector.broadcast %cst_70 : f32 to vector<8x16xf32>
      %95 = arith.mulf %93, %94 : vector<8x16xf32>
      %96 = arith.addf %95, %83 : vector<8x16xf32>
      %cst_71 = arith.constant dense<0xFF800000> : vector<8xf32>
      %97 = vector.multi_reduction <maximumf>, %96, %cst_71 [1] : vector<8x16xf32> to vector<8xf32>
      %98 = vector.shape_cast %97 : vector<8xf32> to vector<8x1xf32>
      %99 = vector.broadcast %98 : vector<8x1xf32> to vector<8x16xf32>
      %100 = arith.subf %96, %99 : vector<8x16xf32>
      %101 = math.exp %100 : vector<8x16xf32>
      %cst_72 = arith.constant dense<0.000000e+00> : vector<8xf32>
      %102 = vector.multi_reduction <add>, %101, %cst_72 [1] : vector<8x16xf32> to vector<8xf32>
      %103 = vector.shape_cast %102 : vector<8xf32> to vector<8x1xf32>
      %104 = tpu.reciprocal %103 {approx = true} : vector<8x1xf32> -> vector<8x1xf32>
      %105 = vector.broadcast %104 : vector<8x1xf32> to vector<8x16xf32>
      %106 = arith.mulf %101, %105 : vector<8x16xf32>
      %107 = arith.truncf %106 : vector<8x16xf32> to vector<8x16xbf16>
      %cst_73 = arith.constant dense<0.000000e+00> : vector<8x16xf32>
      %108 = tpu.matmul %107, %92, %cst_73 {dimension_numbers = #tpu.dot_dimension_numbers<[1], [0], [0], [1], [0, 0, 1, 1], [], []>} : vector<8x16xbf16>, vector<16x16xbf16>, vector<8x16xf32> -> vector<8x16xf32>
      %c0_74 = arith.constant 0 : index
      %c0_75 = arith.constant 0 : index
      %109 = vector.load %arg29[%c0_74, %c0_75] : memref<8x32xf32, #tpu.memory_space<vmem>>, vector<8x32xf32>
      %110 = arith.truncf %108 : vector<8x16xf32> to vector<8x16xbf16>
      %111 = arith.index_cast %c0_i32_59 : i32 to index
      %c0_76 = arith.constant 0 : index
      %c0_77 = arith.constant 0 : index
      %112 = vector.load %arg17[%111, %c0_76, %c0_77] : memref<2x16x32xbf16, #tpu.memory_space<vmem>>, vector<1x16x32xbf16>
      %113 = vector.shape_cast %112 : vector<1x16x32xbf16> to vector<16x32xbf16>
      %cst_78 = arith.constant dense<0.000000e+00> : vector<8x32xf32>
      %114 = tpu.matmul %110, %113, %cst_78 {dimension_numbers = #tpu.dot_dimension_numbers<[1], [0], [0], [1], [0, 0, 1, 1], [], []>} : vector<8x16xbf16>, vector<16x32xbf16>, vector<8x32xf32> -> vector<8x32xf32>
      %115 = arith.addf %109, %114 : vector<8x32xf32>
      %c0_79 = arith.constant 0 : index
      %c0_80 = arith.constant 0 : index
      %116 = vector.load %arg29[%c0_79, %c0_80] : memref<8x32xf32, #tpu.memory_space<vmem>>, vector<8x32xf32>
      tpu.vector_store %arg29[%c0_79, %c0_80], %115 {strides = array<i32>} : memref<8x32xf32, #tpu.memory_space<vmem>>, vector<8x32xf32>,
      %c1_i32_81 = arith.constant 1 : i32
    } else {
    }
    %c0_i32_2 = arith.constant 0 : i32
    %5 = arith.cmpi eq, %arg3, %c0_i32_2 : i32
    %6 = arith.extui %5 : i1 to i32
    %c0_i32_3 = arith.constant 0 : i32
    %7 = arith.cmpi ne, %6, %c0_i32_3 : i32
    scf.if %7 {
      %cst_52 = arith.constant 0xFF800000 : f32
      %77 = vector.broadcast %cst_52 : f32 to vector<8x1xf32>
      %c0_53 = arith.constant 0 : index
      %c0_54 = arith.constant 0 : index
      %78 = vector.load %arg26[%c0_53, %c0_54] : memref<8x1xf32, #tpu.memory_space<vmem>>, vector<8x1xf32>
      tpu.vector_store %arg26[%c0_53, %c0_54], %77 {strides = array<i32>} : memref<8x1xf32, #tpu.memory_space<vmem>>, vector<8x1xf32>,
      %cst_55 = arith.constant 0.000000e+00 : f32
      %79 = vector.broadcast %cst_55 : f32 to vector<8x1xf32>
      %c0_56 = arith.constant 0 : index
      %c0_57 = arith.constant 0 : index
      %80 = vector.load %arg27[%c0_56, %c0_57] : memref<8x1xf32, #tpu.memory_space<vmem>>, vector<8x1xf32>
      tpu.vector_store %arg27[%c0_56, %c0_57], %79 {strides = array<i32>} : memref<8x1xf32, #tpu.memory_space<vmem>>, vector<8x1xf32>,
      %cst_58 = arith.constant 0.000000e+00 : f32
      %81 = vector.broadcast %cst_58 : f32 to vector<8x16xf32>
      %c0_59 = arith.constant 0 : index
      %c0_60 = arith.constant 0 : index
      %82 = vector.load %arg28[%c0_59, %c0_60] : memref<8x16xf32, #tpu.memory_space<vmem>>, vector<8x16xf32>
      tpu.vector_store %arg28[%c0_59, %c0_60], %81 {strides = array<i32>} : memref<8x16xf32, #tpu.memory_space<vmem>>, vector<8x16xf32>,
    } else {
    }
    %c0 = arith.constant 0 : index
    %c0_4 = arith.constant 0 : index
    %c0_5 = arith.constant 0 : index
    %8 = vector.load %arg10[%c0, %c0_4, %c0_5] : memref<1x8x16xbf16, #tpu.memory_space<vmem>>, vector<1x8x16xbf16>
    %9 = vector.shape_cast %8 : vector<1x8x16xbf16> to vector<8x16xbf16>
    %c0_6 = arith.constant 0 : index
    %c0_7 = arith.constant 0 : index
    %c0_8 = arith.constant 0 : index
    %10 = vector.load %arg11[%c0_6, %c0_7, %c0_8] : memref<1x8x16xbf16, #tpu.memory_space<vmem>>, vector<1x8x16xbf16>
    %11 = vector.shape_cast %10 : vector<1x8x16xbf16> to vector<8x16xbf16>
    %c0_9 = arith.constant 0 : index
    %c0_10 = arith.constant 0 : index
    %c0_11 = arith.constant 0 : index
    %12 = vector.load %arg12[%c0_9, %c0_10, %c0_11] : memref<1x8x16xbf16, #tpu.memory_space<vmem>>, vector<1x8x16xbf16>
    %13 = vector.shape_cast %12 : vector<1x8x16xbf16> to vector<8x16xbf16>
    %c0_12 = arith.constant 0 : index
    %c0_13 = arith.constant 0 : index
    %c0_14 = arith.constant 0 : index
    %c0_15 = arith.constant 0 : index
    %14 = vector.load %arg13[%c0_12, %c0_13, %c0_14, %c0_15] : memref<1x8x8x32xbf16, #tpu.memory_space<vmem>>, vector<1x8x8x32xbf16>
    %15 = vector.shape_cast %14 : vector<1x8x8x32xbf16> to vector<8x8x32xbf16>
    %c0_16 = arith.constant 0 : index
    %c0_17 = arith.constant 0 : index
    %c0_18 = arith.constant 0 : index
    %c0_19 = arith.constant 0 : index
    %16 = vector.load %arg6[%c0_16, %c0_17, %c0_18, %c0_19] : memref<1x1x8x8xbf16, #tpu.memory_space<vmem>>, vector<1x1x8x8xbf16>
    %17 = vector.shape_cast %16 : vector<1x1x8x8xbf16> to vector<8x8xbf16>
    %18 = arith.extf %17 : vector<8x8xbf16> to vector<8x8xf32>
    %cst = arith.constant dense<0.000000e+00> : vector<8x8xf32>
    %19 = tpu.matmul %9, %11, %cst {dimension_numbers = #tpu.dot_dimension_numbers<[1], [1], [0], [0], [0, 0, 1, 0], [], []>} : vector<8x16xbf16>, vector<8x16xbf16>, vector<8x8xf32> -> vector<8x8xf32>
    %20 = arith.extf %9 : vector<8x16xbf16> to vector<8x16xf32>
    %c0_20 = arith.constant 0 : index
    %c0_21 = arith.constant 0 : index
    %c0_22 = arith.constant 0 : index
    %21 = vector.load %arg16[%c0_20, %c0_21, %c0_22] : memref<1x1x16xf32, #tpu.memory_space<vmem>>, vector<1x1x16xf32>
    %22 = vector.shape_cast %21 : vector<1x1x16xf32> to vector<1x16xf32>
    %23 = vector.broadcast %22 : vector<1x16xf32> to vector<8x16xf32>
    %24 = arith.addf %20, %23 : vector<8x16xf32>
    %25 = arith.truncf %24 : vector<8x16xf32> to vector<8x16xbf16>
    %c0_23 = arith.constant 0 : index
    %c0_24 = arith.constant 0 : index
    %c0_25 = arith.constant 0 : index
    %26 = vector.load %arg14[%c0_23, %c0_24, %c0_25] : memref<1x16x32xbf16, #tpu.memory_space<vmem>>, vector<1x16x32xbf16>
    %27 = vector.shape_cast %26 : vector<1x16x32xbf16> to vector<16x32xbf16>
    %cst_26 = arith.constant dense<0.000000e+00> : vector<8x32xf32>
    %28 = tpu.matmul %25, %27, %cst_26 {dimension_numbers = #tpu.dot_dimension_numbers<[1], [0], [0], [1], [0, 0, 1, 1], [], []>} : vector<8x16xbf16>, vector<16x32xbf16>, vector<8x32xf32> -> vector<8x32xf32>
    %c0_27 = arith.constant 0 : index
    %c0_28 = arith.constant 0 : index
    %c0_29 = arith.constant 0 : index
    %29 = vector.load %arg15[%c0_27, %c0_28, %c0_29] : memref<1x1x16xf32, #tpu.memory_space<vmem>>, vector<1x1x16xf32>
    %30 = vector.shape_cast %29 : vector<1x1x16xf32> to vector<1x16xf32>
    %31 = vector.broadcast %30 : vector<1x16xf32> to vector<8x16xf32>
    %32 = arith.mulf %24, %31 : vector<8x16xf32>
    %cst_30 = arith.constant dense<0.000000e+00> : vector<8xf32>
    %33 = vector.multi_reduction <add>, %32, %cst_30 [1] : vector<8x16xf32> to vector<8xf32>
    %34 = vector.shape_cast %33 : vector<8xf32> to vector<8x1xf32>
    %35 = arith.extf %15 : vector<8x8x32xbf16> to vector<8x8x32xf32>
    %36 = vector.shape_cast %28 : vector<8x32xf32> to vector<8x1x32xf32>
    %37 = vector.broadcast %36 : vector<8x1x32xf32> to vector<8x8x32xf32>
    %38 = arith.mulf %35, %37 : vector<8x8x32xf32>
    %cst_31 = arith.constant dense<0.000000e+00> : vector<8x8xf32>
    %39 = vector.multi_reduction <add>, %38, %cst_31 [2] : vector<8x8x32xf32> to vector<8x8xf32>
    %40 = arith.addf %19, %39 : vector<8x8xf32>
    %41 = vector.broadcast %34 : vector<8x1xf32> to vector<8x8xf32>
    %42 = arith.addf %40, %41 : vector<8x8xf32>
    %cst_32 = arith.constant 2.500000e-01 : f32
    %43 = vector.broadcast %cst_32 : f32 to vector<8x8xf32>
    %44 = arith.mulf %42, %43 : vector<8x8xf32>
    %45 = arith.addf %44, %18 : vector<8x8xf32>
    %c0_33 = arith.constant 0 : index
    %c0_34 = arith.constant 0 : index
    %46 = vector.load %arg26[%c0_33, %c0_34] : memref<8x1xf32, #tpu.memory_space<vmem>>, vector<8x1xf32>
    %cst_35 = arith.constant dense<0xFF800000> : vector<8xf32>
    %47 = vector.multi_reduction <maximumf>, %45, %cst_35 [1] : vector<8x8xf32> to vector<8xf32>
    %48 = vector.shape_cast %47 : vector<8xf32> to vector<8x1xf32>
    %49 = arith.maximumf %46, %48 : vector<8x1xf32>
    %50 = arith.subf %46, %49 : vector<8x1xf32>
    %51 = math.exp %50 : vector<8x1xf32>
    %52 = vector.broadcast %49 : vector<8x1xf32> to vector<8x8xf32>
    %53 = arith.subf %45, %52 : vector<8x8xf32>
    %54 = math.exp %53 : vector<8x8xf32>
    %c0_36 = arith.constant 0 : index
    %c0_37 = arith.constant 0 : index
    %55 = vector.load %arg27[%c0_36, %c0_37] : memref<8x1xf32, #tpu.memory_space<vmem>>, vector<8x1xf32>
    %56 = arith.mulf %51, %55 : vector<8x1xf32>
    %cst_38 = arith.constant dense<0.000000e+00> : vector<8xf32>
    %57 = vector.multi_reduction <add>, %54, %cst_38 [1] : vector<8x8xf32> to vector<8xf32>
    %58 = vector.shape_cast %57 : vector<8xf32> to vector<8x1xf32>
    %59 = arith.addf %56, %58 : vector<8x1xf32>
    %c0_39 = arith.constant 0 : index
    %c0_40 = arith.constant 0 : index
    %60 = vector.load %arg27[%c0_39, %c0_40] : memref<8x1xf32, #tpu.memory_space<vmem>>, vector<8x1xf32>
    tpu.vector_store %arg27[%c0_39, %c0_40], %59 {strides = array<i32>} : memref<8x1xf32, #tpu.memory_space<vmem>>, vector<8x1xf32>,
    %c0_41 = arith.constant 0 : index
    %c0_42 = arith.constant 0 : index
    %61 = vector.load %arg28[%c0_41, %c0_42] : memref<8x16xf32, #tpu.memory_space<vmem>>, vector<8x16xf32>
    %62 = vector.broadcast %51 : vector<8x1xf32> to vector<8x16xf32>
    %63 = arith.mulf %62, %61 : vector<8x16xf32>
    %64 = arith.truncf %54 : vector<8x8xf32> to vector<8x8xbf16>
    %cst_43 = arith.constant dense<0.000000e+00> : vector<8x16xf32>
    %65 = tpu.matmul %64, %13, %cst_43 {dimension_numbers = #tpu.dot_dimension_numbers<[1], [0], [0], [1], [0, 0, 1, 1], [], []>} : vector<8x8xbf16>, vector<8x16xbf16>, vector<8x16xf32> -> vector<8x16xf32>
    %66 = arith.addf %63, %65 : vector<8x16xf32>
    %c0_44 = arith.constant 0 : index
    %c0_45 = arith.constant 0 : index
    %67 = vector.load %arg28[%c0_44, %c0_45] : memref<8x16xf32, #tpu.memory_space<vmem>>, vector<8x16xf32>
    tpu.vector_store %arg28[%c0_44, %c0_45], %66 {strides = array<i32>} : memref<8x16xf32, #tpu.memory_space<vmem>>, vector<8x16xf32>,
    %c0_46 = arith.constant 0 : index
    %c0_47 = arith.constant 0 : index
    %68 = vector.load %arg26[%c0_46, %c0_47] : memref<8x1xf32, #tpu.memory_space<vmem>>, vector<8x1xf32>
    tpu.vector_store %arg26[%c0_46, %c0_47], %49 {strides = array<i32>} : memref<8x1xf32, #tpu.memory_space<vmem>>, vector<8x1xf32>,
    %c1_i32 = arith.constant 1 : i32
    %69 = arith.cmpi eq, %arg3, %c1_i32 : i32
    %70 = arith.extui %69 : i1 to i32
    %c0_i32_48 = arith.constant 0 : i32
    %71 = arith.cmpi ne, %70, %c0_i32_48 : i32
    scf.if %71 {
      %c0_52 = arith.constant 0 : index
      %c0_53 = arith.constant 0 : index
      %77 = vector.load %arg28[%c0_52, %c0_53] : memref<8x16xf32, #tpu.memory_space<vmem>>, vector<8x16xf32>
      %c0_54 = arith.constant 0 : index
      %c0_55 = arith.constant 0 : index
      %78 = vector.load %arg27[%c0_54, %c0_55] : memref<8x1xf32, #tpu.memory_space<vmem>>, vector<8x1xf32>
      %79 = tpu.reciprocal %78 {approx = true} : vector<8x1xf32> -> vector<8x1xf32>
      %80 = vector.broadcast %79 : vector<8x1xf32> to vector<8x16xf32>
      %81 = arith.mulf %77, %80 : vector<8x16xf32>
      %c0_56 = arith.constant 0 : index
      %c0_57 = arith.constant 0 : index
      %82 = vector.load %arg29[%c0_56, %c0_57] : memref<8x32xf32, #tpu.memory_space<vmem>>, vector<8x32xf32>
      %83 = arith.truncf %81 : vector<8x16xf32> to vector<8x16xbf16>
      %c1_i32_58 = arith.constant 1 : i32
      %84 = arith.addi %c1_i32_58, %arg2 : i32
      %85 = arith.index_cast %84 : i32 to index
      %c0_59 = arith.constant 0 : index
      %c0_60 = arith.constant 0 : index
      %86 = vector.load %arg17[%85, %c0_59, %c0_60] : memref<2x16x32xbf16, #tpu.memory_space<vmem>>, vector<1x16x32xbf16>
      %87 = vector.shape_cast %86 : vector<1x16x32xbf16> to vector<16x32xbf16>
      %cst_61 = arith.constant dense<0.000000e+00> : vector<8x32xf32>
      %88 = tpu.matmul %83, %87, %cst_61 {dimension_numbers = #tpu.dot_dimension_numbers<[1], [0], [0], [1], [0, 0, 1, 1], [], []>} : vector<8x16xbf16>, vector<16x32xbf16>, vector<8x32xf32> -> vector<8x32xf32>
      %89 = arith.addf %82, %88 : vector<8x32xf32>
      %c0_62 = arith.constant 0 : index
      %c0_63 = arith.constant 0 : index
      %90 = vector.load %arg29[%c0_62, %c0_63] : memref<8x32xf32, #tpu.memory_space<vmem>>, vector<8x32xf32>
      tpu.vector_store %arg29[%c0_62, %c0_63], %89 {strides = array<i32>} : memref<8x32xf32, #tpu.memory_space<vmem>>, vector<8x32xf32>,
    } else {
    }
    %c0_i32_49 = arith.constant 0 : i32
    %72 = arith.cmpi eq, %arg2, %c0_i32_49 : i32
    %c1_i32_50 = arith.constant 1 : i32
    %73 = arith.cmpi eq, %arg3, %c1_i32_50 : i32
    %74 = arith.andi %72, %73 : i1
    %75 = arith.extui %74 : i1 to i32
    %c0_i32_51 = arith.constant 0 : i32
    %76 = arith.cmpi ne, %75, %c0_i32_51 : i32
    scf.if %76 {
      %c0_52 = arith.constant 0 : index
      %c0_53 = arith.constant 0 : index
      %c0_54 = arith.constant 0 : index
      %77 = vector.load %arg4[%c0_52, %c0_53, %c0_54] : memref<1x8x32xf32, #tpu.memory_space<vmem>>, vector<1x8x32xf32>
      %78 = vector.shape_cast %77 : vector<1x8x32xf32> to vector<8x32xf32>
      %c0_55 = arith.constant 0 : index
      %c0_56 = arith.constant 0 : index
      %79 = vector.load %arg29[%c0_55, %c0_56] : memref<8x32xf32, #tpu.memory_space<vmem>>, vector<8x32xf32>
      %80 = arith.addf %78, %79 : vector<8x32xf32>
      %c0_57 = arith.constant 0 : index
      %c0_58 = arith.constant 0 : index
      %81 = vector.load %arg19[%c0_57, %c0_58] : memref<1x32xf32, #tpu.memory_space<vmem>>, vector<1x32xf32>
      %c0_59 = arith.constant 0 : index
      %c0_60 = arith.constant 0 : index
      %82 = vector.load %arg20[%c0_59, %c0_60] : memref<1x32xf32, #tpu.memory_space<vmem>>, vector<1x32xf32>
      %cst_61 = arith.constant dense<0.000000e+00> : vector<8xf32>
      %83 = vector.multi_reduction <add>, %80, %cst_61 [1] : vector<8x32xf32> to vector<8xf32>
      %84 = vector.shape_cast %83 : vector<8xf32> to vector<8x1xf32>
      %cst_62 = arith.constant 3.200000e+01 : f32
      %85 = vector.broadcast %cst_62 : f32 to vector<8x1xf32>
      %86 = arith.divf %84, %85 : vector<8x1xf32>
      %87 = vector.broadcast %86 : vector<8x1xf32> to vector<8x32xf32>
      %88 = arith.subf %80, %87 : vector<8x32xf32>
      %89 = arith.mulf %88, %88 : vector<8x32xf32>
      %cst_63 = arith.constant dense<0.000000e+00> : vector<8xf32>
      %90 = vector.multi_reduction <add>, %89, %cst_63 [1] : vector<8x32xf32> to vector<8xf32>
      %91 = vector.shape_cast %90 : vector<8xf32> to vector<8x1xf32>
      %cst_64 = arith.constant 3.200000e+01 : f32
      %92 = vector.broadcast %cst_64 : f32 to vector<8x1xf32>
      %93 = arith.divf %91, %92 : vector<8x1xf32>
      %94 = vector.broadcast %86 : vector<8x1xf32> to vector<8x32xf32>
      %95 = arith.subf %80, %94 : vector<8x32xf32>
      %cst_65 = arith.constant 9.99999997E-7 : f32
      %96 = vector.broadcast %cst_65 : f32 to vector<8x1xf32>
      %97 = arith.addf %93, %96 : vector<8x1xf32>
      %98 = math.rsqrt %97 : vector<8x1xf32>
      %99 = vector.broadcast %98 : vector<8x1xf32> to vector<8x32xf32>
      %100 = arith.mulf %95, %99 : vector<8x32xf32>
      %101 = vector.broadcast %81 : vector<1x32xf32> to vector<8x32xf32>
      %102 = arith.mulf %100, %101 : vector<8x32xf32>
      %103 = vector.broadcast %82 : vector<1x32xf32> to vector<8x32xf32>
      %104 = arith.addf %102, %103 : vector<8x32xf32>
      %105 = arith.truncf %104 : vector<8x32xf32> to vector<8x32xbf16>
      %c0_66 = arith.constant 0 : index
      %c0_67 = arith.constant 0 : index
      %106 = vector.load %arg21[%c0_66, %c0_67] : memref<32x128xbf16, #tpu.memory_space<vmem>>, vector<32x128xbf16>
      %cst_68 = arith.constant dense<0.000000e+00> : vector<8x128xf32>
      %107 = tpu.matmul %105, %106, %cst_68 {dimension_numbers = #tpu.dot_dimension_numbers<[1], [0], [0], [1], [0, 0, 1, 1], [], []>} : vector<8x32xbf16>, vector<32x128xbf16>, vector<8x128xf32> -> vector<8x128xf32>
      %c0_69 = arith.constant 0 : index
      %c0_70 = arith.constant 0 : index
      %108 = vector.load %arg22[%c0_69, %c0_70] : memref<1x128xf32, #tpu.memory_space<vmem>>, vector<1x128xf32>
      %109 = vector.broadcast %108 : vector<1x128xf32> to vector<8x128xf32>
      %110 = arith.addf %107, %109 : vector<8x128xf32>
      %cst_71 = arith.constant 5.000000e-01 : f32
      %111 = vector.broadcast %cst_71 : f32 to vector<8x128xf32>
      %112 = arith.mulf %111, %110 : vector<8x128xf32>
      %cst_72 = arith.constant 4.471500e-02 : f32
      %113 = vector.broadcast %cst_72 : f32 to vector<8x128xf32>
      %114 = arith.mulf %113, %110 : vector<8x128xf32>
      %115 = arith.mulf %114, %110 : vector<8x128xf32>
      %116 = arith.mulf %115, %110 : vector<8x128xf32>
      %117 = arith.addf %110, %116 : vector<8x128xf32>
      %cst_73 = arith.constant 0.797884583 : f32
      %118 = vector.broadcast %cst_73 : f32 to vector<8x128xf32>
      %119 = arith.mulf %118, %117 : vector<8x128xf32>
      %120 = math.tanh %119 : vector<8x128xf32>
      %cst_74 = arith.constant 1.000000e+00 : f32
      %121 = vector.broadcast %cst_74 : f32 to vector<8x128xf32>
      %122 = arith.addf %121, %120 : vector<8x128xf32>
      %123 = arith.mulf %112, %122 : vector<8x128xf32>
      %124 = arith.truncf %123 : vector<8x128xf32> to vector<8x128xbf16>
      %c0_75 = arith.constant 0 : index
      %c0_76 = arith.constant 0 : index
      %125 = vector.load %arg23[%c0_75, %c0_76] : memref<128x32xbf16, #tpu.memory_space<vmem>>, vector<128x32xbf16>
      %cst_77 = arith.constant dense<0.000000e+00> : vector<8x32xf32>
      %126 = tpu.matmul %124, %125, %cst_77 {dimension_numbers = #tpu.dot_dimension_numbers<[1], [0], [0], [1], [0, 0, 1, 1], [], []>} : vector<8x128xbf16>, vector<128x32xbf16>, vector<8x32xf32> -> vector<8x32xf32>
      %c0_78 = arith.constant 0 : index
      %c0_79 = arith.constant 0 : index
      %127 = vector.load %arg24[%c0_78, %c0_79] : memref<1x32xf32, #tpu.memory_space<vmem>>, vector<1x32xf32>
      %128 = vector.broadcast %127 : vector<1x32xf32> to vector<8x32xf32>
      %129 = arith.addf %126, %128 : vector<8x32xf32>
      %130 = arith.addf %80, %129 : vector<8x32xf32>
      %c0_80 = arith.constant 0 : index
      %c0_81 = arith.constant 0 : index
      %c0_82 = arith.constant 0 : index
      %131 = vector.load %arg25[%c0_80, %c0_81, %c0_82] : memref<1x8x32xf32, #tpu.memory_space<vmem>>, vector<1x8x32xf32>
      %132 = vector.shape_cast %131 : vector<1x8x32xf32> to vector<8x32xf32>
      %133 = vector.shape_cast %130 : vector<8x32xf32> to vector<1x8x32xf32>
      tpu.vector_store %arg25[%c0_80, %c0_81, %c0_82], %133 {strides = array<i32>} : memref<1x8x32xf32, #tpu.memory_space<vmem>>, vector<1x8x32xf32>,
    } else {
    }
    return
  }
  func.func @transform_0(%arg0: i32, %arg1: i32, %arg2: i32, %arg3: i32) -> (i32, i32, i32) {
    %c0_i32 = arith.constant 0 : i32
    %c0_i32_0 = arith.constant 0 : i32
    return %arg0, %arg1, %c0_i32 : i32, i32, i32
  }
  func.func @transform_1(%arg0: i32, %arg1: i32, %arg2: i32, %arg3: i32) -> (i32, i32, i32) {
    %c0_i32 = arith.constant 0 : i32
    %c0_i32_0 = arith.constant 0 : i32
    return %arg0, %arg1, %c0_i32 : i32, i32, i32
  }
  func.func @transform_2(%arg0: i32, %arg1: i32, %arg2: i32, %arg3: i32) -> (i32, i32, i32, i32) {
    %c0_i32 = arith.constant 0 : i32
    %c0_i32_0 = arith.constant 0 : i32
    return %arg0, %arg3, %arg1, %c0_i32 : i32, i32, i32, i32
  }
  func.func @transform_3(%arg0: i32, %arg1: i32, %arg2: i32, %arg3: i32) -> (i32, i32, i32, i32) {
    %c0_i32 = arith.constant 0 : i32
    %c0_i32_0 = arith.constant 0 : i32
    %c0_i32_1 = arith.constant 0 : i32
    return %arg0, %c0_i32, %arg1, %c0_i32_0 : i32, i32, i32, i32
  }
  func.func @transform_4(%arg0: i32, %arg1: i32, %arg2: i32, %arg3: i32) -> (i32, i32, i32, i32) {
    %c0_i32 = arith.constant 0 : i32
    %c0_i32_0 = arith.constant 0 : i32
    %c0_i32_1 = arith.constant 0 : i32
    %c0_i32_2 = arith.constant 0 : i32
    return %arg0, %c0_i32, %c0_i32_0, %c0_i32_1 : i32, i32, i32, i32
  }
  func.func @transform_5(%arg0: i32, %arg1: i32, %arg2: i32, %arg3: i32) -> (i32, i32, i32, i32) {
    %c0_i32 = arith.constant 0 : i32
    %c0_i32_0 = arith.constant 0 : i32
    %c0_i32_1 = arith.constant 0 : i32
    %c0_i32_2 = arith.constant 0 : i32
    return %arg0, %c0_i32, %c0_i32_0, %c0_i32_1 : i32, i32, i32, i32
  }
  func.func @transform_6(%arg0: i32, %arg1: i32, %arg2: i32, %arg3: i32) -> (i32, i32, i32) {
    %c1_i32 = arith.constant 1 : i32
    %0 = arith.muli %arg0, %c1_i32 : i32
    %1 = arith.addi %0, %arg2 : i32
    %c0_i32 = arith.constant 0 : i32
    %c0_i32_0 = arith.constant 0 : i32
    return %1, %arg1, %c0_i32 : i32, i32, i32
  }
  func.func @transform_7(%arg0: i32, %arg1: i32, %arg2: i32, %arg3: i32) -> (i32, i32, i32) {
    %c1_i32 = arith.constant 1 : i32
    %0 = arith.muli %arg0, %c1_i32 : i32
    %1 = arith.addi %0, %arg2 : i32
    %c0_i32 = arith.constant 0 : i32
    %c0_i32_0 = arith.constant 0 : i32
    return %1, %arg3, %c0_i32 : i32, i32, i32
  }
  func.func @transform_8(%arg0: i32, %arg1: i32, %arg2: i32, %arg3: i32) -> (i32, i32, i32) {
    %c1_i32 = arith.constant 1 : i32
    %0 = arith.muli %arg0, %c1_i32 : i32
    %1 = arith.addi %0, %arg2 : i32
    %c0_i32 = arith.constant 0 : i32
    %c0_i32_0 = arith.constant 0 : i32
    return %1, %arg3, %c0_i32 : i32, i32, i32
  }
  func.func @transform_9(%arg0: i32, %arg1: i32, %arg2: i32, %arg3: i32) -> (i32, i32, i32, i32) {
    %c1_i32 = arith.constant 1 : i32
    %0 = arith.muli %arg0, %c1_i32 : i32
    %1 = arith.addi %0, %arg2 : i32
    %c0_i32 = arith.constant 0 : i32
    %c0_i32_0 = arith.constant 0 : i32
    return %1, %arg1, %arg3, %c0_i32 : i32, i32, i32, i32
  }
  func.func @transform_10(%arg0: i32, %arg1: i32, %arg2: i32, %arg3: i32) -> (i32, i32, i32) {
    %c0_i32 = arith.constant 0 : i32
    %c0_i32_0 = arith.constant 0 : i32
    %c0_i32_1 = arith.constant 0 : i32
    return %arg2, %c0_i32, %c0_i32_0 : i32, i32, i32
  }
  func.func @transform_11(%arg0: i32, %arg1: i32, %arg2: i32, %arg3: i32) -> (i32, i32, i32) {
    %c0_i32 = arith.constant 0 : i32
    %c0_i32_0 = arith.constant 0 : i32
    %c0_i32_1 = arith.constant 0 : i32
    return %arg2, %c0_i32, %c0_i32_0 : i32, i32, i32
  }
  func.func @transform_12(%arg0: i32, %arg1: i32, %arg2: i32, %arg3: i32) -> (i32, i32, i32) {
    %c0_i32 = arith.constant 0 : i32
    %c0_i32_0 = arith.constant 0 : i32
    %c0_i32_1 = arith.constant 0 : i32
    return %arg2, %c0_i32, %c0_i32_0 : i32, i32, i32
  }
  func.func @transform_13(%arg0: i32, %arg1: i32, %arg2: i32, %arg3: i32) -> (i32, i32, i32) {
    %c0_i32 = arith.constant 0 : i32
    %c0_i32_0 = arith.constant 0 : i32
    %c0_i32_1 = arith.constant 0 : i32
    %c0_i32_2 = arith.constant 0 : i32
    return %c0_i32, %c0_i32_0, %c0_i32_1 : i32, i32, i32
  }
  func.func @transform_14(%arg0: i32, %arg1: i32, %arg2: i32, %arg3: i32) -> (i32, i32) {
    %c0_i32 = arith.constant 0 : i32
    %c0_i32_0 = arith.constant 0 : i32
    %c0_i32_1 = arith.constant 0 : i32
    return %c0_i32, %c0_i32_0 : i32, i32
  }
  func.func @transform_15(%arg0: i32, %arg1: i32, %arg2: i32, %arg3: i32) -> (i32, i32) {
    %c0_i32 = arith.constant 0 : i32
    %c0_i32_0 = arith.constant 0 : i32
    %c0_i32_1 = arith.constant 0 : i32
    return %c0_i32, %c0_i32_0 : i32, i32
  }
  func.func @transform_16(%arg0: i32, %arg1: i32, %arg2: i32, %arg3: i32) -> (i32, i32) {
    %c0_i32 = arith.constant 0 : i32
    %c0_i32_0 = arith.constant 0 : i32
    %c0_i32_1 = arith.constant 0 : i32
    return %c0_i32, %c0_i32_0 : i32, i32
  }
  func.func @transform_17(%arg0: i32, %arg1: i32, %arg2: i32, %arg3: i32) -> (i32, i32) {
    %c0_i32 = arith.constant 0 : i32
    %c0_i32_0 = arith.constant 0 : i32
    %c0_i32_1 = arith.constant 0 : i32
    return %c0_i32, %c0_i32_0 : i32, i32
  }
  func.func @transform_18(%arg0: i32, %arg1: i32, %arg2: i32, %arg3: i32) -> (i32, i32) {
    %c0_i32 = arith.constant 0 : i32
    %c0_i32_0 = arith.constant 0 : i32
    %c0_i32_1 = arith.constant 0 : i32
    return %c0_i32, %c0_i32_0 : i32, i32
  }
  func.func @transform_19(%arg0: i32, %arg1: i32, %arg2: i32, %arg3: i32) -> (i32, i32) {
    %c0_i32 = arith.constant 0 : i32
    %c0_i32_0 = arith.constant 0 : i32
    %c0_i32_1 = arith.constant 0 : i32
    return %c0_i32, %c0_i32_0 : i32, i32
  }
  func.func @transform_20(%arg0: i32, %arg1: i32, %arg2: i32, %arg3: i32) -> (i32, i32) {
    %c0_i32 = arith.constant 0 : i32
    %c0_i32_0 = arith.constant 0 : i32
    %c0_i32_1 = arith.constant 0 : i32
    return %c0_i32, %c0_i32_0 : i32, i32
  }
  func.func @transform_21(%arg0: i32, %arg1: i32, %arg2: i32, %arg3: i32) -> (i32, i32, i32) {
    %c0_i32 = arith.constant 0 : i32
    %c0_i32_0 = arith.constant 0 : i32
    return %arg0, %arg1, %c0_i32 : i32, i32, i32
  }
}

</mosaic_0001>

<bundles_post_ra>
// kernel: tpu_custom_call.1
= control target key start
LH: loop header
LB: loop body
LE: loop exit
PB: predicated region body
PF: predicated region fallthrough
CT: control target
= control target key end

     0   :  { %s3736_s0 = inlined_call_operand.vmem [shape: f32[2,16,32], index: 0, kind: input, shape index: {}]   ;;  %s3737_s1 = inlined_call_operand.vmem [shape: bf16[2,16,16], index: 1, kind: input, shape index: {}]   ;;  %s3738_s2 = inlined_call_operand.vmem [shape: bf16[2,2,16,8], index: 2, kind: input, shape index: {}]   ;;  %s3739_s3 = inlined_call_operand.vmem [shape: bf16[2,1,16,16], index: 3, kind: input, shape index: {}]   ;;  %s3740_s4 = inlined_call_operand.vmem [shape: bf16[2,1,16,16], index: 4, kind: input, shape index: {}]   ;;  %s3741_s5 = inlined_call_operand.vmem [shape: bf16[2,1,16,16], index: 5, kind: input, shape index: {}]   ;;  %s3742_s6 = inlined_call_operand.vmem [shape: bf16[2,16,16], index: 6, kind: input, shape index: {}]   ;;  %s3743_s7 = inlined_call_operand.hbm [shape: bf16[2,16,16], index: 7, kind: input, shape index: {}]   ;;  %s3744_s8 = inlined_call_operand.hbm [shape: bf16[2,16,16], index: 8, kind: input, shape index: {}]   ;;  %s3745_s9 = inlined_call_operand.hbm [shape: bf16[2,16,16,32], index: 9, kind: input, shape index: {}]   ;;  %s3746_s10 = inlined_call_operand.hbm [shape: bf16[1,16,32], index: 10, kind: input, shape index: {}]   ;;  %s3747_s11 = inlined_call_operand.vmem [shape: f32[1,1,16], index: 11, kind: input, shape index: {}]   ;;  %s3748_s12 = inlined_call_operand.vmem [shape: f32[1,1,16], index: 12, kind: input, shape index: {}]   ;;  %s3749_s13 = inlined_call_operand.vmem [shape: bf16[2,16,32], index: 13, kind: input, shape index: {}]   ;;  %s3750_s14 = inlined_call_operand.vmem [shape: f32[1,32], index: 14, kind: input, shape index: {}]   ;;  %s3751_s15 = inlined_call_operand.vmem [shape: f32[1,32], index: 15, kind: input, shape index: {}]   ;;  %s3752_s16 = inlined_call_operand.vmem [shape: f32[1,32], index: 16, kind: input, shape index: {}]   ;;  %s3753_s17 = inlined_call_operand.hbm [shape: bf16[32,128], index: 17, kind: input, shape index: {}]   ;;  %s3754_s18 = inlined_call_operand.vmem [shape: f32[1,128], index: 18, kind: input, shape index: {}]   ;;  %s3755_s19 = inlined_call_operand.vmem [shape: bf16[128,32], index: 19, kind: input, shape index: {}]   ;;  %s3756_s20 = inlined_call_operand.vmem [shape: f32[1,32], index: 20, kind: input, shape index: {}]   ;;  %s3757_s21 = inlined_call_operand.hbm [shape: f32[2,16,32], index: 21, kind: output, shape index: {}]  }
   0x1   :  { %3802 = sst [smem:[#allocation47_spill]] %s3736_s0 }
   0x2   :  { %3803 = sst [smem:[#allocation48_spill]] %s3737_s1 }
   0x3   :  { %3804 = sst [smem:[#allocation49_spill]] %s3738_s2 }
   0x4   :  { %3805 = sst [smem:[#allocation50_spill]] %s3739_s3 }
   0x5   :  { %3806 = sst [smem:[#allocation51_spill]] %s3740_s4 }
   0x6   :  { %3807 = sst [smem:[#allocation52_spill]] %s3741_s5 }
   0x7   :  { %3808 = sst [smem:[#allocation53_spill]] %s3742_s6 }
   0x8   :  { %3809 = sst [smem:[#allocation54_spill]] %s3743_s7 }
   0x9   :  { %3810 = sst [smem:[#allocation55_spill]] %s3744_s8 }
   0xa   :  { %3811 = sst [smem:[#allocation56_spill]] %s3745_s9 }
   0xb   :  { %3812 = sst [smem:[#allocation57_spill]] %s3746_s10 }
   0xc   :  { %3813 = sst [smem:[#allocation58_spill]] %s3747_s11 }
   0xd   :  { %3814 = sst [smem:[#allocation59_spill]] %s3748_s12 }
   0xe   :  { %3815 = sst [smem:[#allocation60_spill]] %s3749_s13 }
   0xf   :  { %3816 = sst [smem:[#allocation61_spill]] %s3750_s14 }
  0x10   :  { %3817 = sst [smem:[#allocation62_spill]] %s3751_s15 }
  0x11   :  { %3818 = sst [smem:[#allocation63_spill]] %s3752_s16 }
  0x12   :  { %3819 = sst [smem:[#allocation64_spill]] %s3753_s17 }
  0x13   :  { %3820 = sst [smem:[#allocation65_spill]] %s3754_s18 }
  0x14   :  { %3821 = sst [smem:[#allocation66_spill]] %s3755_s19 }
  0x15   :  { %3822 = sst [smem:[#allocation67_spill]] %s3756_s20 }
  0x16   :  { %3823 = sst [smem:[#allocation68_spill]] %s3757_s21 }
  0x17   :  { %26 = vsyncpa [#allocation7], 0 }
  0x18   :  { %28 = vsyncpa [#allocation7 + $0x1], 0 }
  0x19   :  { %29 = vsyncpa [#allocation10], 0 }
  0x1a   :  { %31 = vsyncpa [#allocation10 + $0x1], 0 }
  0x1b   :  { %32 = vsyncpa [#allocation13], 0 }
  0x1c   :  { %33 = vsyncpa [#allocation8], 0 }
  0x1d   :  { %35 = vsyncpa [#allocation8 + $0x1], 0  ;;  %s3185_s2 = smov 0   ;;  %s3187_s25 = smov 0  }
  0x1e   :  { %s3189_s26 = smov 0   ;;  %s3191_s27 = smov 0  }
  0x1f   :  { %s3193_s3 = smov 0   ;;  %s3195_s28 = smov 0  }
  0x20   :  { %s3197_s29 = smov 0   ;;  %s3199_s0 = smov 0  }
  0x21   :  { %s3201_s4 = smov 0   ;;  %s3203_s30 = smov 0  }
  0x22   :  { %s3205_s5 = smov 0   ;;  %s3207_s22 = smov 0  }
  0x23   :  { %s3209_s23 = smov 0   ;;  %s3211_s1 = smov 0  }
  0x24   :  { %s3213_s24 = smov 0   ;;  %s3215_s21 = smov 0  }
  0x25 LB: > { %3824 = sst [smem:[#allocation21_spill]] %s2991_s2  ;;  %s3264_s20 = sadd.s32 4294967295, %s3051_s21   ;;  %s3051_s21 = sphi %s3215_s21, %s41_s21   ;;  %s3047_s24 = sphi %s3213_s24, %s3938_s24   ;;  %s3043_s1 = sphi %s3211_s1, %s3937_s1   ;;  %s3039_s23 = sphi %s3209_s23, %s3936_s23   ;;  %s3035_s22 = sphi %s3207_s22, %s3935_s22   ;;  %s3031_s5 = sphi %s3205_s5, %s3934_s5   ;;  %s3027_s30 = sphi %s3203_s30, %s3933_s30   ;;  %s3023_s4 = sphi %s3201_s4, %s3932_s4   ;;  %s3019_s0 = sphi %s3199_s0, %s3931_s0   ;;  %s3015_s29 = sphi %s3197_s29, %s3930_s29   ;;  %s3011_s28 = sphi %s3195_s28, %s3929_s28   ;;  %s3007_s3 = sphi %s3193_s3, %s3928_s3   ;;  %s3003_s27 = sphi %s3191_s27, %s3927_s27   ;;  %s2999_s26 = sphi %s3189_s26, %s3926_s26   ;;  %s2995_s25 = sphi %s3187_s25, %s3940_s25   ;;  %s2991_s2 = sphi %s3185_s2, %s3924_s2  }
  0x26   : > { %3825 = sst [smem:[#allocation22_spill]] %s2995_s25  ;;  %s2321_s18 = sadd.s32 4294967294, %s3051_s21  }
  0x27   : > { %3826 = sst [smem:[#allocation23_spill]] %s2999_s26  ;;  %p3776_p0 = scmp.eq.s32.totalorder %s3264_s20, 0 }
  0x28   : > { %3827 = sst [smem:[#allocation24_spill]] %s3007_s3  ;;  %p349_p1 = scmp.ne.s32.totalorder %s3007_s3, %s3003_s27 }
  0x29   : > { %3828 = sst [smem:[#allocation25_spill]] %s3011_s28  ;;  %p620_p2 = scmp.ne.s32.totalorder %s2999_s26, %s2995_s25 }
  0x2a   : > { %3829 = sst [smem:[#allocation26_spill]] %s3019_s0  ;;  %p621_p3 = scmp.eq.s32.totalorder %s3264_s20, 7 }
  0x2b   : > { %3830 = sst [smem:[#allocation27_spill]] %s3023_s4  ;;  %p3274_p4 = por %p349_p1, %p3776_p0 }
  0x2c   : > { %3831 = sst [smem:[#allocation28_spill]] %s3027_s30  ;;  %p626_p5 = scmp.ne.s32.totalorder %s2995_s25, %s2991_s2 }
  0x2d   : > { %3832 = sst [smem:[#allocation29_spill]] %s3031_s5  ;;  %p3280_p6 = por %p621_p3, %p620_p2 }
  0x2e   : > { %3833 = sst [smem:[#allocation30_spill]] %s3035_s22  ;;  %p627_p7 = scmp.eq.s32.totalorder %s2321_s18, 7 }
  0x2f   : > { %3834 = sst [smem:[#allocation31_spill]] %s3039_s23  ;;  %p2322_p8 = scmp.ge.s32.totalorder %s3051_s21, 1 }
  0x30   : > { %3835 = sst [smem:[#allocation32_spill]] %s3043_s1  ;;  %p634_p9 = scmp.lt.s32.totalorder %s3051_s21, 9 }
  0x31   : > { %3836 = sst [smem:[#allocation33_spill]] %s3047_s24  ;;  %p3286_p10 = por %p627_p7, %p626_p5 }
  0x32   : > { %3837 = sst [smem:[#allocation34_spill]] %s3051_s21  ;;  %p3290_p11 = pnand %p2322_p8, %p634_p9 }
  0x33   : > { %3838 = sst [smem:[#allocation35_spill]] %s3264_s20  ;;  %s3053_s11 = smov [#allocation12]  }
  0x34   : > { %s3839_s19 = scalar_select %p3274_p4, 1, 0 }
  0x35   : > { %s3841_s16 = scalar_select %p3280_p6, 1, 0 }
  0x36   : > { %3840 = sst [smem:[#allocation36_spill]] %s3839_s19  ;;  %s649_s12 = sshll.u32 %s3053_s11, 4  ;;  %s650_s12 = int_to_ptr.vmem [resolvable:$true] %s649_s12 }
  0x37   : > { %3842 = sst [smem:[#allocation37_spill]] %s3841_s16  ;;  %p2538_p12 = pneg %p3290_p11 }
  0x38   : > { %s3843_s15 = scalar_select %p3286_p10, 1, 0 }
  0x39   : > { %p3298_p13 = pnand %p2538_p12, %p3776_p0  ;;  %s2754_s18 = scalar_lea.vmem %s650_s12, 128 }
  0x3a   : > { %3844 = sst [smem:[#allocation38_spill]] %s3843_s15  ;;  %p2755_p2 = scmp.ne.s32.totalorder %s650_s12, %s2754_s18 }
  0x3b   : > { %p3787_p1 = pneg %p3298_p13  ;;  %p2762_p7 = scmp.lt.s32.totalorder %s650_s12, %s650_s12 }
  0x3c   : > { %p2763_p8 = scmp.lt.s32.totalorder %s2754_s18, %s2754_s18 }
  0x3d   : > { %p2757_p3 = pnand %p2755_p2, %p3787_p1 }
  0x3e   : > { %p2764_p9 = por %p2763_p8, %p2762_p7 }
  0x3f   : > { %p2758_p5 = pneg %p2757_p3 }
  0x41   : > { %p2765_p10 = pnand %p2764_p9, %p2758_p5 }
  0x43   : > { %2768 = shalt.err (!%p2765_p10)
}
  0x44   : > { %s3766_s11 = smov 64   ;;  %s3768_s15 = smov 4  }
  0x45   : > { %s3847_s10 = sld [smem:[#allocation57_spill]]  ;;  %s56_s14 = sadd.s32 1, %s3039_s23 }
  0x46   : > { %s63_s13 = sadd.s32 1, %s3043_s1  ;;  %p57_p10 = scmp.ge.s32.totalorder %s56_s14, 2 }
  0x47   : > { %s67_s6 = sadd.s32 1, %s3047_s24  ;;  %p281_p12 = scmp.ne.s32.totalorder %s3023_s4, %s3019_s0 }
  0x48   : > { %s3942_s14 = smov (%p57_p10, %s56_s14), 0  ;;  %s3944_s13 = smov (!%p57_p10, %s63_s13), %s3043_s1 }
  0x49   : > { %3848 = sst [smem:[#allocation39_spill]] %s3942_s14  ;;  %s270_s16 = ssub.s32 %s3039_s23, %s3942_s14 }
  0x4a   : > { %p282_p2 = scmp.eq.s32.totalorder %s3051_s21, 0  ;;  %p65_p3 = scmp.ge.s32.totalorder %s3944_s13, 2 }
  0x4b   : > { %2541 = dma.hbm_to_vmem [thread:$0]  (!%p3298_p13), %s3847_s10, 128, %s650_s12, [#allocation13], %s3766_s11, %s3766_s11, %s3768_s15  }
  0x4c   : > { %p287_p5 = scmp.ne.s32.totalorder %s3019_s0, %s3015_s29  ;;  %p3331_p7 = por %p282_p2, %p281_p12 }
  0x4d   : > { %s336_s18 = sadd.s32 1, %s3011_s28  ;;  %s3946_s13 = smov (%p65_p3, %s3944_s13), 0 }
  0x4e   : > { %3850 = sst [smem:[#allocation40_spill]] %s3946_s13  ;;  %s3948_s6 = smov (!%p65_p3, %s67_s6), %s3047_s24 }
  0x4f   : > { %p3341_p8 = por %p3776_p0, %p287_p5  ;;  %s330_s15 = ssub.s32 %s3043_s1, %s3946_s13 }
  0x50   : > { %p69_p9 = scmp.ge.s32.totalorder %s3948_s6, 2  ;;  %p343_p10 = scmp.ne.s32.totalorder %s3011_s28, %s3007_s3 }
  0x51   : > { %s3851_s11 = scalar_select %p3341_p8, 1, 0 }
  0x52   : > { %s610_s29 = sadd.s32 1, %s2999_s26  ;;  %p3788_p12 = scmp.lt.s32.totalorder %s3051_s21, 8 }
  0x53   : > { %3852 = sst [smem:[#allocation41_spill]] %s3851_s11  ;;  %s3950_s6 = smov (%p69_p9, %s3948_s6), 0 }
  0x54   : > { %3853 = sst [smem:[#allocation42_spill]] %s3950_s6  ;;  %p3355_p3 = por %p343_p10, %p282_p2 }
  0x55   : > { %s3785_s10 = sand.u32 1, %s3023_s4   ;;  %s269_s13 = ssub.s32 %s3047_s24, %s3950_s6 }
  0x56   : > { %s3364_s14 = sshll.u32 %s3785_s10, 2  ;;  %s271_s5 = sor.u32 %s270_s16, %s269_s13 }
  0x57   : > { %s331_s22 = sor.u32 %s330_s15, %s269_s13  ;;  %p272_p5 = scmp.eq.s32.totalorder %s271_s5, 0 }
  0x58   : > { %s333_s25 = sor.u32 %s331_s22, %s270_s16  ;;  %p608_p0 = scmp.eq.s32.totalorder %s331_s22, 0 }
  0x59   : > { %p334_p9 = scmp.eq.s32.totalorder %s333_s25, 0  ;;  %s3855_s19 = sadd.s32 1, %s3023_s4 }
  0x5a   : > { %s3369_s3 = scalar_select %p272_p5, %s3023_s4, %s3855_s19  }
  0x5b   : > { %s3372_s20 = scalar_select %p334_p9, %s3011_s28, %s336_s18  }
  0x5c   : > { %3856 = sst [smem:[#allocation43_spill]] %s3369_s3  ;;  %s2329_s0 = sshll.u32 %s3047_s24, 1 }
  0x5d   : > { %3857 = sst [smem:[#allocation44_spill]] %s3372_s20  ;;  %p3382_p2 = pnand %p3788_p12, %p3331_p7 }
  0x5e   : > { %s3375_s11 = scalar_select %p608_p0, %s2999_s26, %s610_s29  }
  0x5f   : > { %s3387_s13 = sadd.s32 %s3039_s23, %s2329_s0  ;;  %s807_s15 = sand.u32 1, %s3051_s21  }
  0x60   : > { %3858 = sst [smem:[#allocation45_spill]] %s3375_s11  ;;  %s2330_s19 = sshll.u32 %s3387_s13, 6 }
  0x61   : > { %s3860_s8 = sld [smem:[#allocation55_spill]]  ;;  %s811_s16 = scalar_lea.vmem [#allocation9], %s3364_s14 }
  0x62   : > { %s821_s12 = sshll.u32 %s811_s16, 4  ;;  %s2402_s18 = sshll.u32 %s3043_s1, 4  ;;  %s822_s12 = int_to_ptr.vmem [resolvable:$true] %s821_s12 }
  0x63   : > { %s3398_s29 = scalar_lea.sflag [#allocation10], %s807_s15  ;;  %p3790_p0 = pneg %p3382_p2 }
  0x64   : > { %s2782_s6 = scalar_lea.vmem %s822_s12, 64  ;;  %s3056_s0 = smov [#allocation9]  }
  0x65   : > { %p2783_p7 = scmp.ne.s32.totalorder %s822_s12, %s2782_s6  ;;  %s2787_s3 = sshll.u32 %s3056_s0, 4  ;;  %s2788_s3 = int_to_ptr.vmem [resolvable:$false] %s2787_s3 }
  0x66   : > { %s2789_s20 = scalar_lea.vmem %s2788_s3, 128  ;;  %p2790_p9 = scmp.lt.s32.totalorder %s822_s12, %s2788_s3 }
  0x67   : > { %s819_s22 = scalar_lea.hbm %s3860_s8, %s2330_s19  ;;  %p2785_p10 = pnand %p2783_p7, %p3790_p0 }
  0x68   : > { %p2791_p1 = scmp.lt.s32.totalorder %s2789_s20, %s2782_s6 }
  0x69   : > { %p2786_p5 = pneg %p2785_p10 }
  0x6a   : > { %p2792_p12 = por %p2791_p1, %p2790_p9 }
  0x6c   : > { %p2793_p6 = pnand %p2792_p12, %p2786_p5 }
  0x6e   : > { %2796 = shalt.err (!%p2793_p6)
}
  0x6f   : > { %2551 = dma.hbm_to_vmem [thread:$0]  (!%p3382_p2), %s819_s22, 64, %s822_s12, %s3398_s29  }
  0x70   : > { %s839_s15 = sadd.s32 %s3039_s23, %s2402_s18  ;;  %s2337_s25 = sshll.u32 %s3047_s24, 5 }
  0x71   : > { %s3410_s5 = sadd.s32 %s2337_s25, %s839_s15  ;;  %p3861_p7 = scmp.lt.s32.totalorder %s3051_s21, 8 }
  0x72   : > { %s3057_s3 = smov [#allocation14]   ;;  %p3863_p1 = pneg %p3298_p13 }
  0x73   : > { %p3416_p10 = pnand %p3861_p7, %p3355_p3  ;;  %s686_s16 = sshll.u32 %s3057_s3, 4  ;;  %s687_s16 = int_to_ptr.vmem [resolvable:$true] %s686_s16 }
  0x74   : > { %s2808_s0 = scalar_lea.vmem %s687_s16, 256  ;;  %p2816_p9 = scmp.lt.s32.totalorder %s687_s16, %s687_s16 }
  0x75   : > { %p2809_p6 = scmp.ne.s32.totalorder %s687_s16, %s2808_s0  ;;  %p2817_p0 = scmp.lt.s32.totalorder %s2808_s0, %s2808_s0 }
  0x77   : > { %p2811_p12 = pnand %p2809_p6, %p3863_p1  ;;  %p2818_p4 = por %p2817_p0, %p2816_p9 }
  0x79   : > { %p2812_p5 = pneg %p2811_p12 }
  0x7b   : > { %p2819_p8 = pnand %p2818_p4, %p2812_p5 }
  0x7d   : > { %2822 = shalt.err (!%p2819_p8)
}
  0x7e   : > { %s3864_s30 = smov 4   ;;  %s3865_s22 = smov 64  }
  0x7f   : > { %s3866_s17 = sld [smem:[#allocation64_spill]]  ;;  %s790_s0 = scalar_lea.vmem [#allocation6], %s3364_s14 }
  0x80   : > { %s3867_s7 = sld [smem:[#allocation54_spill]]  ;;  %s800_s20 = sshll.u32 %s790_s0, 4  ;;  %s801_s20 = int_to_ptr.vmem [resolvable:$true] %s800_s20 }
  0x81   : > { %s830_s2 = sand.u32 1, %s3011_s28   ;;  %s3868_s8 = sand.u32 1, %s3023_s4  }
  0x82   : > { %s787_s24 = scalar_lea.sflag [#allocation7], %s3868_s8  ;;  %s2836_s1 = scalar_lea.vmem %s801_s20, 64 }
  0x83   : > { %p2837_p4 = scmp.ne.s32.totalorder %s801_s20, %s2836_s1  ;;  %p3869_p8 = pneg %p3382_p2 }
  0x84   : > { %s3058_s12 = smov [#allocation6]  }
  0x85   : > { %2544 = dma.hbm_to_vmem [thread:$0]  (!%p3298_p13), %s3866_s17, 256, %s687_s16, [#allocation13], %s3865_s22, %s3865_s22, %s3864_s30  }
  0x86   : > { %s798_s3 = scalar_lea.hbm %s3867_s7, %s2330_s19  ;;  %p2839_p3 = pnand %p2837_p4, %p3869_p8 }
  0x87   : > { %s2841_s18 = sshll.u32 %s3058_s12, 4  ;;  %s2842_s18 = int_to_ptr.vmem [resolvable:$false] %s2841_s18 }
  0x88   : > { %p2840_p0 = pneg %p2839_p3  ;;  %s2843_s13 = scalar_lea.vmem %s2842_s18, 128 }
  0x89   : > { %p2844_p13 = scmp.lt.s32.totalorder %s801_s20, %s2842_s18  ;;  %p2845_p7 = scmp.lt.s32.totalorder %s2843_s13, %s2836_s1 }
  0x8b   : > { %p2846_p6 = por %p2845_p7, %p2844_p13 }
  0x8d   : > { %p2847_p1 = pnand %p2846_p6, %p2840_p0 }
  0x8f   : > { %2850 = shalt.err (!%p2847_p1)
}
  0x90   : > { %2548 = dma.hbm_to_vmem [thread:$0]  (!%p3382_p2), %s798_s3, 64, %s801_s20, %s787_s24  }
  0x91   : > { %s3870_s8 = sshll.u32 %s3410_s5, 6  ;;  %s3871_s9 = sld [smem:[#allocation56_spill]] }
  0x92   : > { %s2334_s15 = sshll.u32 %s830_s2, 5  ;;  %p2853_p12 = pneg %p3416_p10 }
  0x93   : > { %s832_s25 = scalar_lea.vmem [#allocation11], %s2334_s15  ;;  %s3059_s12 = smov [#allocation11]  }
  0x94   : > { %s844_s0 = sshll.u32 %s832_s25, 4  ;;  %s2869_s10 = sshll.u32 %s3059_s12, 4  ;;  %s845_s0 = int_to_ptr.vmem [resolvable:$true] %s844_s0  ;;  %s2870_s10 = int_to_ptr.vmem [resolvable:$false] %s2869_s10 }
  0x95   : > { %s2864_s1 = scalar_lea.vmem %s845_s0, 512  ;;  %s2871_s18 = scalar_lea.vmem %s2870_s10, 1024 }
  0x96   : > { %p2865_p5 = scmp.ne.s32.totalorder %s845_s0, %s2864_s1  ;;  %p2872_p2 = scmp.lt.s32.totalorder %s845_s0, %s2870_s10 }
  0x97   : > { %s843_s16 = scalar_lea.hbm %s3871_s9, %s3870_s8  ;;  %p2873_p8 = scmp.lt.s32.totalorder %s2871_s18, %s2864_s1 }
  0x98   : > { %p2867_p9 = pnand %p2865_p5, %p2853_p12 }
  0x99   : > { %p2874_p3 = por %p2873_p8, %p2872_p2 }
  0x9a   : > { %p2868_p4 = pneg %p2867_p9 }
  0x9c   : > { %p2875_p0 = pnand %p2874_p3, %p2868_p4 }
  0x9e   : > { %2878 = shalt.err (!%p2875_p0)
}
  0x9f   : > { %s3060_s24 = smov 128   ;;  %856 = sbr.rel (%p3290_p11) target bundleno = 3123 (0xc33), region = 104 }
  0xa0   : > { %2554 = dma.hbm_to_vmem [thread:$0]  (!%p3416_p10), %s843_s16, 512, %s845_s0, %s3398_s29, %s3060_s24, %s3865_s22, %s3864_s30  }
  0xa4   : > { %s3872_s5 = sld [smem:[#allocation26_spill]] }
  0xa5   : > { %s3873_s20 = sld [smem:[#allocation41_spill]] }
  0xaa   : > { %s858_s3 = sand.u32 1, %s3872_s5  }
  0xab   : > { %s3461_s2 = sshll.u32 %s858_s3, 2  ;;  %s859_s13 = scalar_lea.sflag [#allocation7], %s858_s3 }
  0xac   : > { %p3874_p13 = scmp.ne.s32.totalorder %s3873_s20, 0 }
  0xae   : > { %2970 = dma.done.wait (%p3874_p13), %s859_s13, 64  }
  0xaf   : > { %2972 = vsyncadd (%p3874_p13), %s859_s13, 4294967232  ;;  %s3875_s6 = sld [smem:[#allocation35_spill]] }
  0xb5   : > { %s867_s29 = sand.u32 1, %s3875_s6  }
  0xb6   : > { %s868_s30 = scalar_lea.sflag [#allocation10], %s867_s29 }
  0xb7   : > { %2974 = dma.done.wait (%p3874_p13), %s868_s30, 64  }
  0xb8   : > { %2976 = vsyncadd (%p3874_p13), %s868_s30, 4294967232  ;;  %s3876_s22 = sld [smem:[#allocation24_spill]] }
  0xb9   : > { %s3877_s14 = sld [smem:[#allocation36_spill]] }
  0xbe   : > { %s878_s19 = sand.u32 1, %s3876_s22  }
  0xbf   : > { %s2342_s16 = sshll.u32 %s878_s19, 5  ;;  %p3878_p11 = scmp.ne.s32.totalorder %s3877_s14, 0 }
  0xc0   : > { %s3475_s15 = scalar_lea.vmem [#allocation11], %s2342_s16 }
  0xc1   : > { %2978 = dma.done.wait (%p3878_p11), %s868_s30, 512  }
  0xc2   : > { %2980 = vsyncadd (%p3878_p11), %s868_s30, 4294966784  ;;  %p3879_p10 = scmp.eq.s32.totalorder %s3875_s6, 0 }
  0xc4   : > { %2982 = dma.done.wait (%p3879_p10), [#allocation13], 384   ;;  %p3880_p7 = pmov %p3879_p10 }
  0xc5   : > { %s3881_s25 = sld [smem:[#allocation22_spill]] }
  0xc6   : > { %2984 = vsyncadd (%p3880_p7), [#allocation13], 4294966912  ;;  %s3882_s0 = sld [smem:[#allocation30_spill]] }
  0xc7   : > { %s3883_s1 = sld [smem:[#allocation29_spill]] }
  0xc8   : > { %s3884_s12 = sld [smem:[#allocation28_spill]] }
  0xc9   : > { %s3885_s22 = sld [smem:[#allocation47_spill]] }
  0xca   : > { %s3889_s17 = sld [smem:[#allocation51_spill]] }
  0xcb   : > { %s3795_s10 = sand.u32 1, %s3881_s25   ;;  %s3887_s25 = sld [smem:[#allocation48_spill]] }
  0xcc   : > { %p1018_p6 = scmp.lt.s32.totalorder %s3882_s0, 1  ;;  %s3489_s18 = sshll.u32 %s3795_s10, 3 }
  0xcd   : > { %p1020_p1 = scmp.lt.s32.totalorder %s3883_s1, 1  ;;  %s3890_s28 = sld [smem:[#allocation52_spill]] }
  0xce   : > { %p1036_p12 = scmp.lt.s32.totalorder %s3884_s12, 1  ;;  %s3952_s0 = smov (!%p1018_p6, %s3882_s0), 1 }
  0xcf   : > { %s3954_s1 = smov (!%p1020_p1, %s3883_s1), 1  ;;  %s2346_s24 = sshll.u32 %s3952_s0, 1 }
  0xd0   : > { %s2351_s5 = sshll.u32 %s3952_s0, 2  ;;  %s1023_s20 = sadd.s32 %s2346_s24, %s3954_s1 }
  0xd1   : > { %s2403_s3 = sshll.u32 %s3952_s0, 3  ;;  %s2347_s13 = sshll.u32 %s1023_s20, 3 }
  0xd2   : > { %s3495_s6 = sshll.u32 %s1023_s20, 2  ;;  %s3500_s14 = scalar_lea.vmem %s3885_s22, %s2347_s13 }
  0xd3   : > { %3886 = sst [smem:[#allocation46_spill]] %s3500_s14  ;;  %s1033_s10 = scalar_lea.vmem %s3887_s25, %s3495_s6 }
  0xd4   : > { %s1037_s27 = scalar_select %p1036_p12, %s3884_s12, 1 }
  0xd5   : > { %s3888_s0 = sld [smem:[#allocation50_spill]]  ;;  %s1058_s23 = scalar_lea.vmem %s3889_s17, %s2403_s3 }
  0xd6   : > { %s2350_s4 = sshll.u32 %s1037_s27, 1  ;;  %s3517_s11 = scalar_lea.vmem %s3890_s28, %s2403_s3 }
  0xd7   : > { %s1041_s13 = sadd.s32 %s2350_s4, %s3954_s1  ;;  %s3891_s19 = sld [smem:[#allocation53_spill]] }
  0xd8   : > { %s1043_s25 = sadd.s32 %s2351_s5, %s1041_s13  ;;  %p1086_p5 = scmp.eq.s32.totalorder %s3884_s12, 0 }
  0xd9   : > { %s2352_s21 = sshll.u32 %s1043_s25, 2  ;;  %s1017_s9 = scalar_lea.vmem [#allocation15], %s3489_s18  ;;  %v2711_v0 = vld [vmem:[%s1058_s23] sm:$0xff] (%p1086_p5)   ;;  %v3061_v1 = vmov (%p1086_p5), 0.0   ;;  %vm1112_vm0 = vcmask (%p1086_p5), 130048   ;;  %vm3062_vm1 = vmmov (%p1086_p5), 0  }
  0xda   : > { %2452 = vmatprep.subr.bf16.mxu0 (%p1086_p5), %v3061_v1  ;;  %2458 = vmatprep.subr.bf16.mxu1 (%p1086_p5), %v3061_v1  ;;  %v1117_v2 = vsel (%p1086_p5), %vm1112_vm0, %v2711_v0, 0  ;;  %v1100_v4 = vld [vmem:[%s1033_s10] sm:$0xf] (%p1086_p5)  ;;  %s3894_s4 = sld [smem:[#allocation61_spill]] (%p1086_p5)  ;;  %vm1098_vm2 = vcmask (%p1086_p5), 261120  }
  0xdb   : > { %s1053_s7 = scalar_lea.vmem %s3888_s0, %s3495_s6  ;;  %s3892_s0 = sld [smem:[#allocation49_spill]]  ;;  %2454 = vmatprep.mubr.msk.bf16.mxu0 (%p1086_p5), %vm3062_vm1, %v3061_v1  ;;  %2460 = vmatprep.mubr.msk.bf16.mxu1 (%p1086_p5), %vm3062_vm1, %v3061_v1  ;;  %v1101_v5 = vunpack.c.l.bf16 (%p1086_p5), %v1100_v4  ;;  %v2712_v18 = vld [vmem:[%s3517_s11] sm:$0xff] (%p1086_p5)  }
  0xdc   : > { %2453 = vmatpush3.bf16.xpose.msra.mxu0 (%p1086_p5), %v1117_v2  ;;  %v1102_v3 = vld [vmem:[%s1053_s7] sm:$0xf] (%p1086_p5)  ;;  %2459 = vmatpush3.bf16.msra.mxu1 (%p1086_p5), %v2712_v18 }
  0xdd   : > { %s1072_s16 = scalar_lea.vmem %s3891_s19, %s3495_s6  ;;  %1090 = sbr.rel (!%p1086_p5) target bundleno = 1132 (0x46c), region = 128  ;;  %2464 = vmatprep.subr.bf16.mxu1 (%p1086_p5), %v3061_v1 }
  0xe0   : > { %v2362_v24 = vld [vmem:[%s3894_s4] ss:$0 sm:$0xff] (%p1086_p5) }
  0xe1   : > { %s3527_s14 = scalar_lea.vmem %s3892_s0, %s2352_s21  ;;  %s3893_s21 = sld [smem:[#allocation60_spill]] (%p1086_p5)  ;;  %1099 = vst.msk [vmem:[#allocation5] sm:$0xff] (%p1086_p5), %vm1098_vm2, %v2362_v24 }
  0xe3   : > { %2455 = vmatmul.mubr.msk.bf16.vlgmr.msra.gmra.mxu0 %vm1112_vm0, %v1102_v3 }
  0xe7   : > { %v2713_v22 = vld [vmem:[%s3893_s21] sm:$0xff]  }
  0xe8   : > { %v1222_v30 = vld [vmem:[#allocation5] sm:$0xff] }
 0x1a3   : > { %v1153_v6 = vpop.f32.mrf.mxu0 }
 0x1a4   : > { %v1159_v7 = vmul.f32 0.25, %v1153_v6 }
 0x1a5   : > { %v2456_v8 = vpop.f32.mrf.mxu0 }
 0x1a6   : > { %v1160_v9 = vadd.f32 %v1159_v7, %v1101_v5 }
 0x1a7   : > { %v1156_v10 = vpop.f32.mrf.mxu0 }
 0x1a8   : > { %v1161_v11 = vsel %vm1112_vm0, %v1160_v9, -inf }
 0x1a9   : > { %v2457_v12 = vpop.f32.mrf.mxu0  ;;  %1162 = vmax.xlane.f32.xlu0 %v1161_v11 }
 0x232   : > { %v1163_v13 = vpop.xlane.xlu0 %1162 }
 0x233   : > { %v1164_v14 = vsub.f32 %v1160_v9, %v1163_v13 }
 0x235   : > { %v1165_v15 = vmul.f32 1.442695, %v1164_v14 }
 0x237   : > { %2714 = vpow2.f32 %v1165_v15 }
 0x244   : > { %v2715_v16 = vpop.eup %2714 }
 0x245   : > { %v1167_v17 = vsel %vm1112_vm0, %v2715_v16, 0.0 }
 0x246   : > { %1168 = vadd.xlane.f32.xlu0 %v1167_v17 }
 0x2cf   : > { %v1169_v19 = vpop.xlane.xlu0 %1168 }
 0x2d0   : > { %2716 = vrcp.f32 %v1169_v19 }
 0x2dd   : > { %v2717_v20 = vpop.eup %2716 }
 0x2de   : > { %v1171_v21 = vmul.f32 %v2717_v20, %v2715_v16 }
 0x2e0   : > { %v1172_v23 = vpack.c.bf16 %v1171_v21, %v1171_v21 }
 0x2e2   : > { %2461 = vmatmul.mubr.msk.bf16.vlgmr.msra.gmra.mxu1 %vm1112_vm0, %v1172_v23 }
 0x2e3   : > { %2465 = vmatpush3.bf16.msra.mxu1 %v2713_v22  ;;  %2466 = vmatprep.mubr.msk.bf16.mxu1 %vm3062_vm1, %v3061_v1 }
 0x3a2   : > { %v1216_v25 = vpop.f32.mrf.mxu1 }
 0x3a3   : > { %v1223_v26 = vpack.c.bf16 %v1216_v25, %v1216_v25 }
 0x3a4   : > { %v2462_v27 = vpop.f32.mrf.mxu1 }
 0x3a5   : > { %2467 = vmatmul.mubr.msk.bf16.vlgmr.msra.gmra.mxu1 %vm1112_vm0, %v1223_v26 }
 0x3a6   : > { %v1219_v28 = vpop.f32.mrf.mxu1 }
 0x3a8   : > { %v2463_v29 = vpop.f32.mrf.mxu1 }
 0x465   : > { %v1269_v31 = vpop.f32.mrf.mxu1 }
 0x466   : > { %v1275_v32 = vadd.f32 %v1269_v31, %v1222_v30 }
 0x467   : > { %v2468_v33 = vpop.f32.mrf.mxu1 }
 0x468   : > { %1276 = vst.msk [vmem:[#allocation5] sm:$0xff] %vm1098_vm2, %v1275_v32 }
 0x469   : > { %v1272_v34 = vpop.f32.mrf.mxu1 }
 0x46b   : > { %v2469_v35 = vpop.f32.mrf.mxu1 }
 0x46c PF: > { %s3895_s23 = sld [smem:[#allocation28_spill]] }
 0x472   : > { %p2369_p9 = scmp.ne.s32.totalorder %s3895_s23, 0 }
 0x474   : > { %1279 = sbr.rel (%p2369_p9) target bundleno = 1148 (0x47c), region = 132 }
 0x479   : > { %vm1280_vm3 = vcmask 7168   ;;  %vm1283_vm4 = vcmask 130048   ;;  %v3063_v36 = vmov -inf   ;;  %v3064_v37 = vmov 0.0  }
 0x47a   : > { %1281 = vst.msk [vmem:[#allocation2] sm:$0xff] %vm1280_vm3, %v3063_v36  ;;  %1282 = vst.msk [vmem:[#allocation3] sm:$0xff] %vm1280_vm3, %v3064_v37 }
 0x47b   : > { %1284 = vst.msk [vmem:[#allocation4] sm:$0xff] %vm1283_vm4, %v3064_v37 }
 0x47c PF: > { %v2720_v38 = vld [vmem:[#allocation12] sm:$0xff]   ;;  %v3065_v39 = vmov 0.0   ;;  %v1285_v40 = vld [vmem:[%s1072_s16] sm:$0xf]  ;;  %s3897_s5 = sld [smem:[#allocation59_spill]]  ;;  %vm3066_vm5 = vmmov 0   ;;  %v1384_v47 = vlaneseq }
 0x47d   : > { %2470 = vmatprep.subr.bf16.mxu0 %v3065_v39  ;;  %2476 = vmatprep.subr.bf16.mxu1 %v3065_v39  ;;  %v1298_v42 = vunpack.c.l.bf16 %v1285_v40  ;;  %vm1316_vm6 = vcmask 130048   ;;  %s3898_s3 = scalar_lea.vmem [#allocation6], %s3461_s2  ;;  %v3067_v51 = vmov 1966171168   ;;  %v2408_v56 = vld [vmem:[%s3475_s15] sm:$0xff]   ;;  %v2423_v1 = vld [vmem:[%s3475_s15 + $0x8] sm:$0xff]  }
 0x47e   : > { %2471 = vmatpush3.bf16.msra.mxu0 %v2720_v38  ;;  %2472 = vmatprep.mubr.msk.bf16.mxu0 %vm3066_vm5, %v3065_v39  ;;  %v1286_v43 = vld [vmem:[%s3898_s3] sm:$0xf]  ;;  %v1385_v48 = vshrl.u32 %v1384_v47, 7  ;;  %v1511_v49 = vand.u32 127, %v1384_v47  ;;  %v1382_v52 = vunpack.c.l.s4 %v3067_v51  ;;  %v2409_v0 = vunpack.c.l.bf16 %v2408_v56  ;;  %v2425_v25 = vld [vmem:[%s3475_s15 + $0x18] sm:$0xff]   ;;  %s3899_s20 = sld [smem:[#allocation58_spill]] }
 0x47f   : > { %v1563_v44 = vsel %vm1316_vm6, %v1286_v43, 0  ;;  %2478 = vmatprep.mubr.msk.bf16.mxu1 %vm3066_vm5, %v3065_v39  ;;  %2482 = vmatprep.subr.bf16.mxu0 %v3065_v39  ;;  %v2410_v3 = vunpack.c.h.bf16 %v2408_v56  ;;  %v2424_v4 = vld [vmem:[%s3475_s15 + $0x10] sm:$0xff]   ;;  %vm1477_vm7 = vcmask 261120   ;;  %v2413_v10 = vunpack.c.l.bf16 %v2423_v1  ;;  %s3901_s29 = sld [smem:[#allocation28_spill]] }
 0x480   : > { %2477 = vmatpush3.bf16.xpose.msra.mxu1 %v1563_v44  ;;  %v3564_v50 = vsub.s32 %v1511_v49, %v1385_v48  ;;  %v1383_v53 = vunpack.c.0.s8 %v1382_v52  ;;  %v1431_v59 = vsub.s32 0, %v1385_v48  ;;  %v2417_v15 = vunpack.c.l.bf16 %v2424_v4 }
 0x481   : > { %v2414_v17 = vunpack.c.h.bf16 %v2423_v1  ;;  %v2418_v26 = vunpack.c.h.bf16 %v2424_v4  ;;  %v2421_v33 = vunpack.c.l.bf16 %v2425_v25  ;;  %v2422_v37 = vunpack.c.h.bf16 %v2425_v25 }
 0x482   : > { %v2370_v41 = vld [vmem:[%s3897_s5] ss:$0 sm:$0xff]  ;;  %v1386_v54 = vsub.s32 %v1383_v53, %v1385_v48  ;;  %vm1544_vm8 = vcmask 1041409   ;;  %vm1546_vm9 = vcmask 1042434   ;;  %vm1548_vm10 = vcmask 1043459  }
 0x483   : > { %v3558_v45 = vadd.f32 %v2370_v41, %v1298_v42  ;;  %vm1550_vm11 = vcmask 1044484   ;;  %vm1552_vm12 = vcmask 1045509   ;;  %vm1554_vm13 = vcmask 1046534  }
 0x484   : > { %vm1556_vm14 = vcmask 1047559   ;;  %vm1609_vm15 = vcmask 64512   ;;  %vm1631_vm0 = vcmask 7168   ;;  %vm1644_vm1 = vcmask 1043456  }
 0x485   : > { %v1307_v46 = vpack.c.bf16 %v3558_v45, %v3558_v45  ;;  %p1691_p4 = scmp.eq.s32.totalorder %s3901_s29, 1  ;;  %p2376_p2 = scmp.ne.s32.totalorder %s3901_s29, 1 }
 0x486   : > { %s3902_s13 = sld [smem:[#allocation60_spill]] (!%p2376_p2) }
 0x487   : > { %2473 = vmatmul.mubr.msk.bf16.vlgmr.msra.gmra.mxu0 %vm1316_vm6, %v1307_v46  ;;  %2479 = vmatmul.mubr.msk.bf16.vlgmr.msra.gmra.mxu1 %vm1316_vm6, %v1285_v40 }
 0x488   : > { %2484 = vmatprep.mubr.msk.bf16.mxu0 %vm3066_vm5, %v3065_v39  ;;  %v2373_v39 = vld [vmem:[%s3899_s20] ss:$0 sm:$0xff] }
 0x489   : > { %v1367_v42 = vmul.f32 %v2373_v39, %v3558_v45 }
 0x48b   : > { %v1368_v47 = vsel %vm1316_vm6, %v1367_v42, 0.0 }
 0x547   : > { %v1354_v55 = vpop.f32.mrf.mxu0  ;;  %v1599_v49 = vpop.f32.mrf.mxu1 }
 0x548   : > { %v1380_v57 = vcombine.high %v1354_v55, %v1354_v55  ;;  %v1387_v58 = vrot.slane %v1354_v55, %v1386_v54 }
 0x549   : > { %v2474_v60 = vpop.f32.mrf.mxu0  ;;  %v2480_v51 = vpop.f32.mrf.mxu1 }
 0x54a   : > { %v1394_v61 = vrot.slane %v1380_v57, %v1386_v54  ;;  %v1395_v62 = vcombine.high %v1387_v58, %v1387_v58  ;;  %v1403_v63 = vrot.slane %v1387_v58, %v1386_v54 }
 0x54b   : > { %v1357_v2 = vpop.f32.mrf.mxu0  ;;  %v1602_v52 = vpop.f32.mrf.mxu1 }
 0x54c   : > { %v1396_v5 = vcombine.high %v1394_v61, %v1394_v61  ;;  %v1410_v6 = vrot.slane %v1394_v61, %v1386_v54  ;;  %v1417_v7 = vrot.slane %v1395_v62, %v1386_v54  ;;  %v1432_v8 = vrot.slane %v1403_v63, %v1431_v59 }
 0x54d   : > { %v2475_v9 = vpop.f32.mrf.mxu0  ;;  %v1425_v11 = vcombine.high %v1403_v63, %v1403_v63  ;;  %v2481_v53 = vpop.f32.mrf.mxu1 }
 0x54e   : > { %v1469_v12 = vmul.f32 %v2409_v0, %v1432_v8  ;;  %v1436_v13 = vrot.slane %v1417_v7, %v1431_v59  ;;  %v1427_v14 = vcombine.high %v1417_v7, %v1417_v7  ;;  %v1448_v18 = vrot.slane %v1410_v6, %v1431_v59 }
 0x54f   : > { %v1440_v16 = vrot.slane %v1425_v11, %v1431_v59  ;;  %v1424_v19 = vrot.slane %v1396_v5, %v1386_v54  ;;  %v1426_v23 = vcombine.high %v1410_v6, %v1410_v6 }
 0x550   : > { %v1478_v20 = vsel %vm1477_vm7, %v1469_v12, 0.0  ;;  %v1470_v21 = vmul.f32 %v2410_v3, %v1436_v13  ;;  %v1444_v22 = vrot.slane %v1427_v14, %v1431_v59  ;;  %v1473_v32 = vmul.f32 %v2417_v15, %v1448_v18  ;;  %v1296_v13 = vld [vmem:[%s3527_s14] sm:$0xf]  ;;  %s3900_s14 = scalar_lea.vmem [#allocation9], %s3461_s2 }
 0x551   : > { %1479 = vadd.xlane.f32.xlu0 %v1478_v20  ;;  %v1471_v24 = vmul.f32 %v2413_v10, %v1440_v16  ;;  %v1452_v29 = vrot.slane %v1424_v19, %v1431_v59  ;;  %v1428_v30 = vcombine.high %v1424_v19, %v1424_v19  ;;  %v1456_v34 = vrot.slane %v1426_v23, %v1431_v59 }
 0x552   : > { %v1472_v28 = vmul.f32 %v2414_v17, %v1444_v22  ;;  %v1481_v31 = vsel %vm1477_vm7, %v1470_v21, 0.0  ;;  %v1490_v40 = vsel %vm1477_vm7, %v1473_v32, 0.0  ;;  %v1297_v16 = vunpack.c.l.bf16 %v1296_v13  ;;  %v1608_v21 = vld [vmem:[#allocation2] sm:$0xff] }
 0x553   : > { %v1484_v27 = vsel %vm1477_vm7, %v1471_v24, 0.0  ;;  %v1474_v36 = vmul.f32 %v2418_v26, %v1452_v29  ;;  %v1460_v38 = vrot.slane %v1428_v30, %v1431_v59  ;;  %v1475_v41 = vmul.f32 %v2421_v33, %v1456_v34  ;;  %v1287_v24 = vld [vmem:[%s3900_s14] sm:$0xf] }
 0x554   : > { %1485 = vadd.xlane.f32.xlu1 %v1484_v27  ;;  %v1487_v35 = vsel %vm1477_vm7, %v1472_v28, 0.0  ;;  %v3068_v20 = vmov 0   ;;  %v1646_v25 = vsel %vm1644_vm1, %v1287_v24, 0  ;;  %v1625_v34 = vld [vmem:[#allocation3] sm:$0xff] }
 0x555   : > { %1482 = vadd.xlane.f32.xlu0 %v1481_v31  ;;  %v1493_v43 = vsel %vm1477_vm7, %v1474_v36, 0.0  ;;  %v1476_v44 = vmul.f32 %v2422_v37, %v1460_v38  ;;  %v1496_v46 = vsel %vm1477_vm7, %v1475_v41, 0.0  ;;  %2719 = vset.pattern.permute.xlu1 %v3068_v20  ;;  %v1633_v38 = vld [vmem:[#allocation4] sm:$0xff] }
 0x556   : > { %2718 = vset.pattern.permute.xlu0 %v3068_v20  ;;  %2483 = vmatpush3.bf16.msra.mxu0 %v1646_v25 }
 0x557   : > { %v1499_v48 = vsel %vm1477_vm7, %v1476_v44, 0.0 }
 0x558   : > { %1488 = vadd.xlane.f32.xlu1 %v1487_v35 }
 0x559   : > { %1491 = vadd.xlane.f32.xlu0 %v1490_v40 }
 0x55c   : > { %1494 = vadd.xlane.f32.xlu1 %v1493_v43 }
 0x55d   : > { %1497 = vadd.xlane.f32.xlu0 %v1496_v46 }
 0x560   : > { %1500 = vadd.xlane.f32.xlu1 %v1499_v48 }
 0x561   : > { %1369 = vadd.xlane.f32.xlu0 %v1368_v47 }
 0x5da   : > { %v1480_v54 = vpop.xlane.xlu0 %1479 }
 0x5db   : > { %v1515_v56 = vrot.slane %v1480_v54, %v3564_v50 }
 0x5dd   : > { %v1486_v55 = vpop.xlane.xlu1 %1485 }
 0x5de   : > { %v1483_v45 = vpop.xlane.xlu0 %1482  ;;  %v1523_v58 = vrot.slane %v1486_v55, %v3564_v50 }
 0x5df   : > { %v1519_v57 = vrot.slane %v1483_v45, %v3564_v50 }
 0x5e1   : > { %v1545_v59 = vsel %vm1544_vm8, %v1519_v57, %v1515_v56  ;;  %v1489_v60 = vpop.xlane.xlu1 %1488 }
 0x5e2   : > { %v1547_v61 = vsel %vm1546_vm9, %v1523_v58, %v1545_v59  ;;  %v1527_v62 = vrot.slane %v1489_v60, %v3564_v50  ;;  %v1492_v63 = vpop.xlane.xlu0 %1491 }
 0x5e3   : > { %v1531_v0 = vrot.slane %v1492_v63, %v3564_v50 }
 0x5e4   : > { %v1549_v1 = vsel %vm1548_vm10, %v1527_v62, %v1547_v61 }
 0x5e5   : > { %v1551_v2 = vsel %vm1550_vm11, %v1531_v0, %v1549_v1  ;;  %v1495_v3 = vpop.xlane.xlu1 %1494 }
 0x5e6   : > { %v1535_v4 = vrot.slane %v1495_v3, %v3564_v50  ;;  %v1498_v5 = vpop.xlane.xlu0 %1497 }
 0x5e7   : > { %v1539_v6 = vrot.slane %v1498_v5, %v3564_v50 }
 0x5e8   : > { %v1553_v7 = vsel %vm1552_vm12, %v1535_v4, %v1551_v2 }
 0x5e9   : > { %v1555_v8 = vsel %vm1554_vm13, %v1539_v6, %v1553_v7  ;;  %v1501_v9 = vpop.xlane.xlu1 %1500 }
 0x5ea   : > { %v1543_v10 = vrot.slane %v1501_v9, %v3564_v50  ;;  %v1370_v11 = vpop.xlane.xlu0 %1369 }
 0x5ec   : > { %v1557_v12 = vsel %vm1556_vm14, %v1543_v10, %v1555_v8 }
 0x5ed   : > { %v1600_v14 = vadd.f32 %v1599_v49, %v1557_v12 }
 0x5ef   : > { %v1605_v15 = vadd.f32 %v1600_v14, %v1370_v11 }
 0x5f1   : > { %v1606_v17 = vmul.f32 0.25, %v1605_v15 }
 0x5f3   : > { %v1607_v18 = vadd.f32 %v1606_v17, %v1297_v16 }
 0x5f5   : > { %v1610_v19 = vsel %vm1609_vm15, %v1607_v18, -inf }
 0x5f6   : > { %1611 = vmax.xlane.f32.xlu1 %v1610_v19 }
 0x67f   : > { %v1612_v22 = vpop.xlane.xlu1 %1611 }
 0x680   : > { %v1613_v50 = vmax.f32 %v1608_v21, %v1612_v22 }
 0x682   : > { %v1614_v23 = vsub.f32 %v1608_v21, %v1613_v50  ;;  %1690 = vst.msk [vmem:[#allocation2] sm:$0xff] %vm1631_vm0, %v1613_v50  ;;  %1619 = vperm.xlu0 %2718, %v1613_v50  }
 0x684   : > { %v1615_v30 = vmul.f32 1.442695, %v1614_v23 }
 0x6fd   : > { %v1620_v26 = vpop.permute.xlu0 %1619 }
 0x6fe   : > { %v1622_v27 = vsub.f32 %v1607_v18, %v1620_v26 }
 0x700   : > { %v1623_v28 = vmul.f32 1.442695, %v1622_v27 }
 0x702   : > { %2721 = vpow2.f32 %v1623_v28 }
 0x703   : > { %2723 = vpow2.f32 %v1615_v30 }
 0x70f   : > { %v2722_v29 = vpop.eup %2721 }
 0x710   : > { %v1627_v31 = vsel %vm1609_vm15, %v2722_v29, 0.0  ;;  %v1640_v32 = vpack.c.bf16 %v2722_v29, %v2722_v29  ;;  %v2724_v33 = vpop.eup %2723 }
 0x711   : > { %1628 = vadd.xlane.f32.xlu1 %v1627_v31  ;;  %v1626_v35 = vmul.f32 %v2724_v33, %v1625_v34 }
 0x712   : > { %2485 = vmatmul.mubr.msk.bf16.vlgmr.msra.gmra.mxu0 %vm1609_vm15, %v1640_v32 }
 0x722   : > { %1636 = vperm.xlu1 %2719, %v2724_v33  }
 0x79a   : > { %v1629_v36 = vpop.xlane.xlu1 %1628 }
 0x79b   : > { %v1630_v37 = vadd.f32 %v1629_v36, %v1626_v35 }
 0x79d   : > { %1632 = vst.msk [vmem:[#allocation3] sm:$0xff] %vm1631_vm0, %v1630_v37 }
 0x79e   : > { %v1637_v39 = vpop.permute.xlu1 %1636 }
 0x79f   : > { %v1639_v40 = vmul.f32 %v1637_v39, %v1633_v38 }
 0x7d2   : > { %v1682_v41 = vpop.f32.mrf.mxu0 }
 0x7d3   : > { %v1688_v42 = vadd.f32 %v1682_v41, %v1639_v40 }
 0x7d4   : > { %v2486_v43 = vpop.f32.mrf.mxu0  ;;  %1694 = sbr.rel (%p2376_p2) target bundleno = 2351 (0x92f), region = 136 }
 0x7d5   : > { %1689 = vst.msk [vmem:[#allocation4] sm:$0xff] %vm1316_vm6, %v1688_v42 }
 0x7d6   : > { %v1685_v44 = vpop.f32.mrf.mxu0 }
 0x7d8   : > { %v2487_v46 = vpop.f32.mrf.mxu0 }
 0x7d9   : > { %v1696_v47 = vld [vmem:[#allocation3] sm:$0xff]  ;;  %v3069_v48 = vmov 0   ;;  %v3070_v51 = vmov 0.0   ;;  %vm3071_vm2 = vmmov 0   ;;  %v1704_v56 = vld [vmem:[#allocation5] sm:$0xff] }
 0x7da   : > { %2725 = vset.pattern.permute.xlu0 %v3069_v48  ;;  %2727 = vrcp.f32 %v1696_v47  ;;  %v2726_v49 = vld [vmem:[%s3902_s13 + $0x8] sm:$0xff]   ;;  %2488 = vmatprep.subr.bf16.mxu0 %v3070_v51 }
 0x7db   : > { %2489 = vmatpush3.bf16.msra.mxu0 %v2726_v49  ;;  %2490 = vmatprep.mubr.msk.bf16.mxu0 %vm3071_vm2, %v3070_v51 }
 0x7dc   : > { %v1695_v53 = vld [vmem:[#allocation4] sm:$0xff] }
 0x7e7   : > { %v2728_v52 = vpop.eup %2727 }
 0x7e8   : > { %1700 = vperm.xlu0 %2725, %v2728_v52  }
 0x863   : > { %v1701_v54 = vpop.permute.xlu0 %1700 }
 0x864   : > { %v1703_v55 = vmul.f32 %v1701_v54, %v1695_v53 }
 0x866   : > { %v1705_v45 = vpack.c.bf16 %v1703_v55, %v1703_v55 }
 0x868   : > { %2491 = vmatmul.mubr.msk.bf16.vlgmr.msra.gmra.mxu0 %vm1316_vm6, %v1705_v45 }
 0x928   : > { %v1755_v57 = vpop.f32.mrf.mxu0 }
 0x929   : > { %v1761_v58 = vadd.f32 %v1755_v57, %v1704_v56 }
 0x92a   : > { %v2492_v59 = vpop.f32.mrf.mxu0 }
 0x92b   : > { %1762 = vst.msk [vmem:[#allocation5] sm:$0xff] %vm1477_vm7, %v1761_v58 }
 0x92c   : > { %v1758_v60 = vpop.f32.mrf.mxu0 }
 0x92e   : > { %v2493_v61 = vpop.f32.mrf.mxu0 }
 0x92f PF: > { %1766 = sbr.rel (!%p1691_p4) target bundleno = 3094 (0xc16), region = 140  ;;  %s3904_s19 = sld [smem:[#allocation46_spill]] (%p1691_p4)  ;;  %v2729_v7 = vld [vmem:[#allocation14 + $0x8] sm:$0xff] (%p1691_p4)   ;;  %v3072_v8 = vmov (%p1691_p4), 0.0   ;;  %vm3073_vm3 = vmmov (%p1691_p4), 0   ;;  %v2730_v9 = vld [vmem:[#allocation14] sm:$0xff] (%p1691_p4)  }
 0x930   : > { %2494 = vmatprep.subr.bf16.mxu0 (%p1691_p4), %v3072_v8  ;;  %2498 = vmatprep.mubr.msk.bf16.mxu0 (%p1691_p4), %vm3073_vm3, %v3072_v8  ;;  %s3905_s8 = sld [smem:[#allocation62_spill]] (%p1691_p4) }
 0x931   : > { %2495 = vmatpush3.bf16.msra.mxu0 (%p1691_p4), %v2729_v7  ;;  %2502 = vmatprep.subr.bf16.mxu1 (%p1691_p4), %v3072_v8  ;;  %s3906_s7 = sld [smem:[#allocation63_spill]] (%p1691_p4) }
 0x932   : > { %v1768_v63 = vld [vmem:[#allocation5] sm:$0xff] (%p1691_p4)  ;;  %2496 = vmatprep.subr.bf16.mxu0 (%p1691_p4), %v3072_v8  ;;  %2518 = vmatprep.mubr.msk.bf16.mxu1 (%p1691_p4), %vm3073_vm3, %v3072_v8  ;;  %s3907_s26 = sld [smem:[#allocation66_spill]] (%p1691_p4) }
 0x933   : > { %s3909_s13 = sld [smem:[#allocation65_spill]] (%p1691_p4) }
 0x934   : > { %s3910_s16 = sld [smem:[#allocation67_spill]] }
 0x935   : > { %v1767_v62 = vld [vmem:[%s3904_s19] sm:$0xff]  ;;  %2497 = vmatpush3.bf16.msra.mxu0 %v2730_v9 }
 0x936   : > { %v3610_v0 = vadd.f32 %v1768_v63, %v1767_v62  ;;  %v2382_v14 = vld [vmem:[%s3905_s8] ss:$0 sm:$0xff] }
 0x937   : > { %v2383_v16 = vld [vmem:[%s3906_s7] ss:$0 sm:$0xff] }
 0x938   : > { %v1772_v1 = vsel %vm1477_vm7, %v3610_v0, 0.0  ;;  %s3908_s11 = smov %s3907_s26  ;;  %v2731_v20 = vld [vmem:[%s3907_s26 + $0x38] sm:$0xff]  }
 0x939   : > { %1773 = vadd.xlane.f32.xlu0 %v1772_v1  ;;  %2503 = vmatpush3.bf16.msra.mxu1 %v2731_v20  ;;  %v2732_v21 = vld [vmem:[%s3908_s11 + $0x30] sm:$0xff]   ;;  %v2733_v22 = vld [vmem:[%s3908_s11 + $0x28] sm:$0xff]   ;;  %v2734_v50 = vld [vmem:[%s3908_s11 + $0x20] sm:$0xff]  }
 0x93a   : > { %2504 = vmatprep.subr.bf16.mxu1 %v3072_v8  ;;  %v2735_v23 = vld [vmem:[%s3908_s11 + $0x18] sm:$0xff]   ;;  %v2736_v24 = vld [vmem:[%s3908_s11 + $0x10] sm:$0xff]   ;;  %v2737_v25 = vld [vmem:[%s3908_s11 + $0x8] sm:$0xff]  }
 0x93b   : > { %v2738_v26 = vld [vmem:[%s3908_s11] sm:$0xff]  }
 0x93c   : > { %v2384_v27 = vld [vmem:[%s3909_s13] ss:$0 sm:$0xff] }
 0x93d   : > { %2505 = vmatpush3.bf16.msra.mxu1 %v2732_v21  ;;  %v2388_v43 = vld [vmem:[%s3910_s16] ss:$0 sm:$0xff] }
 0x93e   : > { %2506 = vmatprep.subr.bf16.mxu1 %v3072_v8 }
 0x941   : > { %2507 = vmatpush3.bf16.msra.mxu1 %v2733_v22 }
 0x942   : > { %2508 = vmatprep.subr.bf16.mxu1 %v3072_v8 }
 0x945   : > { %2509 = vmatpush3.bf16.msra.mxu1 %v2734_v50 }
 0x946   : > { %2510 = vmatprep.subr.bf16.mxu1 %v3072_v8 }
 0x949   : > { %2511 = vmatpush3.bf16.msra.mxu1 %v2735_v23 }
 0x94a   : > { %2512 = vmatprep.subr.bf16.mxu1 %v3072_v8 }
 0x94d   : > { %2513 = vmatpush3.bf16.msra.mxu1 %v2736_v24 }
 0x94e   : > { %2514 = vmatprep.subr.bf16.mxu1 %v3072_v8 }
 0x951   : > { %2515 = vmatpush3.bf16.msra.mxu1 %v2737_v25 }
 0x952   : > { %2516 = vmatprep.subr.bf16.mxu1 %v3072_v8 }
 0x955   : > { %2517 = vmatpush3.bf16.msra.mxu1 %v2738_v26 }
 0x9c2   : > { %v1774_v2 = vpop.xlane.xlu0 %1773 }
 0x9c3   : > { %v1776_v3 = vmul.f32 0.03125, %v1774_v2 }
 0x9c5   : > { %v1777_v4 = vsub.f32 %v3610_v0, %v1776_v3 }
 0x9c7   : > { %v1778_v5 = vmul.f32 %v1777_v4, %v1777_v4 }
 0x9c9   : > { %v1779_v6 = vsel %vm1477_vm7, %v1778_v5, 0.0 }
 0x9ca   : > { %1780 = vadd.xlane.f32.xlu0 %v1779_v6 }
 0xa53   : > { %v1781_v10 = vpop.xlane.xlu0 %1780 }
 0xa54   : > { %v1782_v11 = vmul.f32 0.03125, %v1781_v10 }
 0xa56   : > { %v1783_v12 = vadd.f32 1e-06, %v1782_v11 }
 0xa58   : > { %2739 = vrsqrt.f32 %v1783_v12 }
 0xa65   : > { %v2740_v13 = vpop.eup %2739 }
 0xa66   : > { %v1785_v15 = vmul.f32 %v2740_v13, %v1777_v4 }
 0xa68   : > { %v1792_v17 = vmul.f32 %v2382_v14, %v1785_v15 }
 0xa6a   : > { %v1799_v18 = vadd.f32 %v2383_v16, %v1792_v17 }
 0xa6c   : > { %v1800_v19 = vpack.c.bf16 %v1799_v18, %v1799_v18 }
 0xa6e   : > { %2499 = vmatmul.mubr.msk.bf16.vlgmr.msra.gmra.mxu0 %vm1477_vm7, %v1800_v19 }
 0xb2e   : > { %v1861_v28 = vpop.f32.mrf.mxu0 }
 0xb2f   : > { %v1862_v29 = vadd.f32 %v2384_v27, %v1861_v28 }
 0xb30   : > { %v2500_v30 = vpop.f32.mrf.mxu0 }
 0xb31   : > { %v1868_v31 = vmul.f32 0.044715, %v1862_v29  ;;  %v1867_v39 = vmul.f32 0.5, %v1862_v29 }
 0xb32   : > { %v1864_v32 = vpop.f32.mrf.mxu0 }
 0xb33   : > { %v1869_v33 = vmul.f32 %v1868_v31, %v1862_v29 }
 0xb34   : > { %v2501_v34 = vpop.f32.mrf.mxu0 }
 0xb35   : > { %v1870_v35 = vmul.f32 %v1869_v33, %v1862_v29 }
 0xb37   : > { %v1871_v36 = vadd.f32 %v1870_v35, %v1862_v29 }
 0xb39   : > { %v1872_v37 = vmul.f32 0.7978846, %v1871_v36 }
 0xb3b   : > { %2741 = vtanh.f32 %v1872_v37 }
 0xb48   : > { %v2742_v38 = vpop.eup %2741 }
 0xb49   : > { %v1874_v40 = vadd.f32 1.0, %v2742_v38 }
 0xb4b   : > { %v1875_v41 = vmul.f32 %v1874_v40, %v1867_v39 }
 0xb4d   : > { %v1876_v42 = vpack.c.bf16 %v1875_v41, %v1875_v41 }
 0xb4f   : > { %2519 = vmatmul.mubr.bf16.vlgmr.msra.gmra.mxu1 %v1876_v42 }
 0xc0f   : > { %v1982_v44 = vpop.f32.mrf.mxu1 }
 0xc10   : > { %v1983_v46 = vadd.f32 %v2388_v43, %v1982_v44 }
 0xc11   : > { %v2520_v47 = vpop.f32.mrf.mxu1 }
 0xc12   : > { %v1988_v48 = vadd.f32 %v1983_v46, %v3610_v0 }
 0xc13   : > { %v1985_v49 = vpop.f32.mrf.mxu1 }
 0xc14   : > { %1989 = vst.msk [vmem:[%s1017_s9] sm:$0xff] %vm1477_vm7, %v1988_v48 }
 0xc15   : > { %v2521_v51 = vpop.f32.mrf.mxu1 }
 0xc16 PF: > { %s3911_s25 = sld [smem:[#allocation30_spill]]  ;;  %s2006_s21 = sshll.u32 %s1017_s9, 4  ;;  %s2007_s21 = int_to_ptr.vmem [resolvable:$true] %s2006_s21 }
 0xc17   : > { %s3912_s8 = sld [smem:[#allocation29_spill]]  ;;  %s2879_s5 = scalar_lea.vmem %s2007_s21, 128 }
 0xc18   : > { %s3913_s24 = sld [smem:[#allocation22_spill]]  ;;  %p2880_p8 = scmp.ne.s32.totalorder %s2007_s21, %s2879_s5 }
 0xc19   : > { %s3914_s0 = sld [smem:[#allocation37_spill]]  ;;  %s3074_s3 = smov [#allocation15]  }
 0xc1a   : > { %s3915_s23 = sld [smem:[#allocation68_spill]]  ;;  %s2883_s6 = sshll.u32 %s3074_s3, 4  ;;  %s2884_s6 = int_to_ptr.vmem [resolvable:$false] %s2883_s6 }
 0xc1b   : > { %s2885_s15 = scalar_lea.vmem %s2884_s6, 256  ;;  %p2886_p11 = scmp.lt.s32.totalorder %s2007_s21, %s2884_s6 }
 0xc1c   : > { %s2398_s7 = sshll.u32 %s3911_s25, 1  ;;  %p2887_p10 = scmp.lt.s32.totalorder %s2885_s15, %s2879_s5 }
 0xc1d   : > { %s2002_s17 = sadd.s32 %s3912_s8, %s2398_s7 }
 0xc1e   : > { %s2399_s26 = sshll.u32 %s2002_s17, 7  ;;  %s3917_s1 = sand.u32 1, %s3913_s24  }
 0xc1f   : > { %s1991_s10 = scalar_lea.sflag [#allocation8], %s3917_s1  ;;  %p3918_p3 = scmp.ne.s32.totalorder %s3914_s0, 0 }
 0xc20   : > { %s3916_s12 = smov %s3915_s23  ;;  %s2004_s27 = scalar_lea.hbm %s3915_s23, %s2399_s26 }
 0xc21   : > { %p2881_p0 = pnand %p2880_p8, %p3918_p3  ;;  %p2888_p7 = por %p2887_p10, %p2886_p11 }
 0xc23   : > { %p2882_p13 = pneg %p2881_p0 }
 0xc25   : > { %p2889_p6 = pnand %p2888_p7, %p2882_p13 }
 0xc27   : > { %2892 = shalt.err (!%p2889_p6)
}
 0xc28   : > { %s2893_s18 = scalar_lea.hbm %s2004_s27, 128  ;;  %s2897_s14 = scalar_lea.hbm %s3916_s12, 512 }
 0xc29   : > { %p2894_p1 = scmp.ne.s32.totalorder %s2004_s27, %s2893_s18  ;;  %p2898_p9 = scmp.lt.s32.totalorder %s2004_s27, %s3916_s12 }
 0xc2a   : > { %p2899_p4 = scmp.lt.s32.totalorder %s2897_s14, %s2893_s18 }
 0xc2b   : > { %p2895_p12 = pnand %p2894_p1, %p3918_p3 }
 0xc2c   : > { %p2900_p2 = por %p2899_p4, %p2898_p9 }
 0xc2d   : > { %p2896_p5 = pneg %p2895_p12 }
 0xc2f   : > { %p2901_p8 = pnand %p2900_p2, %p2896_p5 }
 0xc31   : > { %2904 = shalt.err (!%p2901_p8)
}
 0xc32   : > { %2536 = dma.vmem_to_hbm [thread:$0]  (%p3918_p3), %s2007_s21, 128, %s2004_s27, %s1991_s10  }
 0xc33 PF: > { %s3919_s30 = sld [smem:[#allocation34_spill]] }
 0xc34   : > { %s3920_s13 = sld [smem:[#allocation21_spill]] }
 0xc35   : > { %s3921_s22 = sld [smem:[#allocation38_spill]] }
 0xc39   : > { %p2564_p0 = scmp.ge.s32.totalorder %s3919_s30, 2 }
 0xc3a   : > { %s2018_s19 = sand.u32 1, %s3920_s13  }
 0xc3b   : > { %p3922_p13 = scmp.ne.s32.totalorder %s3921_s22, 0  ;;  %s2019_s16 = scalar_lea.sflag [#allocation8], %s2018_s19 }
 0xc3d   : > { %p2556_p11 = pnand %p2564_p0, %p3922_p13 }
 0xc3f   : > { %p2557_p10 = pneg %p2556_p11 }
 0xc41   : > { %2986 = dma.done.wait (%p2557_p10), %s2019_s16, 128  }
 0xc42   : > { %2988 = vsyncadd (%p2557_p10), %s2019_s16, 4294967168  ;;  %s41_s21 = sadd.s32 1, %s3919_s30   ;;  %s3924_s2 = sld [smem:[#allocation22_spill]] }
 0xc43   : > { %p3683_p7 = scmp.ge.s32.totalorder %s41_s21, 10   ;;  %s3925_s8 = sld [smem:[#allocation23_spill]] }
 0xc44   : > { %s3926_s26 = sld [smem:[#allocation45_spill]] }
 0xc45   : > { %s3927_s27 = sld [smem:[#allocation24_spill]] }
 0xc46   : > { %s3928_s3 = sld [smem:[#allocation25_spill]] }
 0xc47   : > { %s3929_s28 = sld [smem:[#allocation44_spill]] }
 0xc48   : > { %s3930_s29 = sld [smem:[#allocation26_spill]] }
 0xc49   : > { %s3931_s0 = sld [smem:[#allocation27_spill]]  ;;  %s3940_s25 = smov %s3925_s8 }
 0xc4a   : > { %s3932_s4 = sld [smem:[#allocation43_spill]] }
 0xc4b   : > { %s3933_s30 = sld [smem:[#allocation31_spill]] }
 0xc4c   : > { %s3934_s5 = sld [smem:[#allocation32_spill]]  ;;  %40 = sbr.rel (!%p3683_p7) target bundleno = 37 (0x25), region = 226 }
 0xc4d   : > { %s3935_s22 = sld [smem:[#allocation33_spill]] }
 0xc4e   : > { %s3936_s23 = sld [smem:[#allocation39_spill]] }
 0xc4f   : > { %s3937_s1 = sld [smem:[#allocation40_spill]] }
 0xc50   : > { %s3938_s24 = sld [smem:[#allocation42_spill]] }
 0xc51   :  { %2024 = vsyncpa [#allocation7], 1 }
 0xc52   :  { %2026 = vsyncpa [#allocation7 + $0x1], 1 }
 0xc53   :  { %2027 = vsyncpa [#allocation10], 1 }
 0xc54   :  { %2029 = vsyncpa [#allocation10 + $0x1], 1 }
 0xc55   :  { %2030 = vsyncpa [#allocation13], 1 }
 0xc56   :  { %2031 = vsyncpa [#allocation8], 1 }
 0xc57   :  { %2033 = vsyncpa [#allocation8 + $0x1], 1 }

</bundles_post_ra>
